<compile_context>
chip_gen: v7x
topology: tpu7x:2x2x1
jax: 0.10.0
libtpu: 0.0.40
codegen_flags: <defaults>
</compile_context>

<pallas_src>
import math

import jax
import jax.numpy as jnp
from jax import lax
from jax.experimental import pallas as pl
from jax.experimental.pallas import tpu as pltpu


# ----------------------------- config (synthetic) -----------------------------
B = 2          # batch
S = 8          # decoder sequence length (q_len)
SE = 8         # encoder sequence length (k_len for cross attention)
D = 32         # d_model
H = 4          # head_size (number of heads)
DK = D // H    # d_k per head
DFF = 4 * D    # feed-forward hidden dim
LN_EPS = 1e-5

_BF16 = jnp.bfloat16


# ----------------------------- kernel helpers ---------------------------------
def _layernorm(x, ln_ref):
    # x: (S, D) f32; ln_ref: (2, D) f32 with row 0 = gamma, row 1 = beta.
    g = ln_ref[0:1, :]
    b = ln_ref[1:2, :]
    mu = jnp.mean(x, axis=-1, keepdims=True)
    var = jnp.mean((x - mu) ** 2, axis=-1, keepdims=True)
    return (x - mu) * lax.rsqrt(var + LN_EPS) * g + b


def _gelu(x):
    # TODO(synk): PyTorch nn.GELU default is the exact erf form; tanh approximation
    # is used here for robust Mosaic lowering (~1e-3 level difference).
    c = math.sqrt(2.0 / math.pi)
    return 0.5 * x * (1.0 + jnp.tanh(c * (x + 0.044715 * x * x * x)))


def _attend(q, k, v, wo_bf16, add_mask):
    """Multi-head attention core, everything kept in registers.

    q: (Sq, D) f32 (scale already folded into the q projection weights),
    k, v: (Sk, D) f32, wo_bf16: (D, D) bf16, add_mask: (Sq, Sk) f32 additive or None.
    Returns (Sq, D) f32.
    """
    head_outs = []
    for h in range(H):                      # H=4, fully unrolled at trace time
        lo = h * DK
        qh = q[:, lo:lo + DK].astype(_BF16)   # (Sq, DK)
        kh = k[:, lo:lo + DK].astype(_BF16)   # (Sk, DK)
        vh = v[:, lo:lo + DK].astype(_BF16)   # (Sk, DK)
        # score = qh @ kh^T  (contract on DK without materializing a transpose)
        score = lax.dot_general(qh, kh, (((1,), (1,)), ((), ())),
                                preferred_element_type=jnp.float32)   # (Sq, Sk) f32
        if add_mask is not None:
            score = score + add_mask
        # manual softmax: exp on EUP, divide replaced by EUP reciprocal
        m = jnp.max(score, axis=-1, keepdims=True)
        p = jnp.exp(score - m)
        denom = jnp.sum(p, axis=-1, keepdims=True)
        p = p * pl.reciprocal(denom, approx=True)
        head_outs.append(jnp.dot(p.astype(_BF16), vh,
                                 preferred_element_type=jnp.float32))  # (Sq, DK)
    att = jnp.concatenate(head_outs, axis=-1)                          # (Sq, D) f32
    return jnp.dot(att.astype(_BF16), wo_bf16[...],
                   preferred_element_type=jnp.float32)


# --------------------------------- kernel --------------------------------------
def decoder_kernel(
    x_ref, enc_ref, mask_ref,
    ln1_ref, sa_wqkv_ref, sa_wo_ref,
    ln2_ref, ca_wq_ref, ca_wkv_ref, ca_wo_ref,
    ln3_ref, ff_w1_ref, ff_b1_ref, ff_w2_ref, ff_b2_ref,
    out_ref,
):
    x = x_ref[0]          # (S, D)  f32
    enc = enc_ref[0]      # (SE, D) f32
    add_mask = mask_ref[0]  # (S, S) f32 additive (0 keep / -1e30 masked)

    # ---- masked self attention (pre-norm, residual add) ----
    res = x
    h = _layernorm(x, ln1_ref)
    qkv = jnp.dot(h.astype(_BF16), sa_wqkv_ref[...],
                  preferred_element_type=jnp.float32)          # (S, 3D) f32
    q, k, v = qkv[:, 0:D], qkv[:, D:2 * D], qkv[:, 2 * D:3 * D]
    x = res + _attend(q, k, v, sa_wo_ref, add_mask)

    # ---- cross attention (pre-norm, residual add, no mask) ----
    res = x
    h = _layernorm(x, ln2_ref)
    q = jnp.dot(h.astype(_BF16), ca_wq_ref[...],
                preferred_element_type=jnp.float32)            # (S, D) f32
    kv = jnp.dot(enc.astype(_BF16), ca_wkv_ref[...],
                 preferred_element_type=jnp.float32)           # (SE, 2D) f32
    k, v = kv[:, 0:D], kv[:, D:2 * D]
    x = res + _attend(q, k, v, ca_wo_ref, None)

    # ---- feed-forward GELU (pre-norm, NO residual add — matches reference) ----
    h = _layernorm(x, ln3_ref)
    h1 = jnp.dot(h.astype(_BF16), ff_w1_ref[...],
                 preferred_element_type=jnp.float32) + ff_b1_ref[...]
    h1 = _gelu(h1)
    out = jnp.dot(h1.astype(_BF16), ff_w2_ref[...],
                  preferred_element_type=jnp.float32) + ff_b2_ref[...]

    # D=32 < 128 lanes -> masked stores are unavoidable at this toy width.
    out_ref[0] = out


# --------------------------------- wrapper --------------------------------------
@jax.jit
def decoder_forward(x, enc, add_mask, packed):
    (ln1, sa_wqkv, sa_wo,
     ln2, ca_wq, ca_wkv, ca_wo,
     ln3, ff_w1, ff_b1, ff_w2, ff_b2) = packed

    seq_spec = lambda shape: pl.BlockSpec(shape, lambda b: (b, 0, 0))
    # Weights are constant across the batch grid: same block every step.
    full2d = lambda arr: pl.BlockSpec(arr.shape, lambda b: (0, 0))

    in_specs = [
        seq_spec((1, S, D)),    # x
        seq_spec((1, SE, D)),   # encoder input
        seq_spec((1, S, S)),    # additive mask
        full2d(ln1), full2d(sa_wqkv), full2d(sa_wo),
        full2d(ln2), full2d(ca_wq), full2d(ca_wkv), full2d(ca_wo),
        full2d(ln3), full2d(ff_w1), full2d(ff_b1), full2d(ff_w2), full2d(ff_b2),
    ]

    return pl.pallas_call(
        decoder_kernel,
        out_shape=jax.ShapeDtypeStruct((B, S, D), jnp.float32),
        grid_spec=pltpu.PrefetchScalarGridSpec(
            num_scalar_prefetch=0,
            grid=(B,),
            in_specs=in_specs,
            out_specs=pl.BlockSpec((1, S, D), lambda b: (b, 0, 0)),
            scratch_shapes=[],          # no VMEM scratch — heads stay in vregs
        ),
        compiler_params=pltpu.CompilerParams(
            # batch elements are independent -> shard across 2 TCs on v7x;
            # no-op on v5e/v6e (1 TC). (At these tiny dims the alternative of
            # collapsing the grid to one step is within noise.)
            dimension_semantics=("parallel",),
        ),
    )(x, enc, add_mask,
      ln1, sa_wqkv, sa_wo,
      ln2, ca_wq, ca_wkv, ca_wo,
      ln3, ff_w1, ff_b1, ff_w2, ff_b2)


# ------------------------------ parameter setup ---------------------------------
def _xavier_normal(key, out_dim, in_dim):
    std = math.sqrt(2.0 / (in_dim + out_dim))
    # PyTorch Linear stores (out, in); transpose to (in, out) so y = x @ W.
    w = jax.random.normal(key, (out_dim, in_dim), dtype=jnp.float32) * std
    return w.T


def make_packed_params(key):
    """One-time (outside the kernel / jit) weight packing:
       - fuse QKV / KV projection weights,
       - fold 1/sqrt(d_k) into the q projections,
       - cast matmul weights to bf16 (LN params / biases stay f32)."""
    keys = jax.random.split(key, 12)
    scale = 1.0 / math.sqrt(DK)

    # self-attention projections (D, D) each, stored (in, out)
    sa_wq = _xavier_normal(keys[0], D, D) * scale
    sa_wk = _xavier_normal(keys[1], D, D)
    sa_wv = _xavier_normal(keys[2], D, D)
    sa_wo = _xavier_normal(keys[3], D, D)
    sa_wqkv = jnp.concatenate([sa_wq, sa_wk, sa_wv], axis=1).astype(_BF16)  # (D, 3D)
    sa_wo = sa_wo.astype(_BF16)

    # cross-attention projections
    ca_wq = (_xavier_normal(keys[4], D, D) * scale).astype(_BF16)           # (D, D)
    ca_wk = _xavier_normal(keys[5], D, D)
    ca_wv = _xavier_normal(keys[6], D, D)
    ca_wkv = jnp.concatenate([ca_wk, ca_wv], axis=1).astype(_BF16)          # (D, 2D)
    ca_wo = _xavier_normal(keys[7], D, D).astype(_BF16)

    # layernorm affine params packed as (2, D): row 0 = gamma, row 1 = beta
    ln = jnp.concatenate([jnp.ones((1, D), jnp.float32),
                          jnp.zeros((1, D), jnp.float32)], axis=0)
    ln1, ln2, ln3 = ln, ln, ln

    # feed-forward (Linear(D, DFF) -> GELU -> Linear(DFF, D)), stored (in, out)
    ff_w1 = _xavier_normal(keys[8], DFF, D).astype(_BF16)    # (D, DFF)
    ff_b1 = jax.random.normal(keys[9], (1, DFF), jnp.float32) * 0.02
    ff_w2 = _xavier_normal(keys[10], D, DFF).astype(_BF16)   # (DFF, D)
    ff_b2 = jax.random.normal(keys[11], (1, D), jnp.float32) * 0.02

    return (ln1, sa_wqkv, sa_wo,
            ln2, ca_wq, ca_wkv, ca_wo,
            ln3, ff_w1, ff_b1, ff_w2, ff_b2)


if __name__ == "__main__":
    key = jax.random.PRNGKey(0)
    kx, kenc, kp = jax.random.split(key, 3)

    x = jax.random.normal(kx, (B, S, D), dtype=jnp.float32)
    enc = jax.random.normal(kenc, (B, SE, D), dtype=jnp.float32)

    # causal mask as an ADDITIVE mask: 0.0 = attend, -1e30 = masked
    causal = jnp.tril(jnp.ones((S, S), jnp.float32))
    add_mask = jnp.where(causal == 0.0, jnp.float32(-1e30), jnp.float32(0.0))
    add_mask = jnp.broadcast_to(add_mask, (B, S, S))

    packed = make_packed_params(kp)

    out = decoder_forward(x, enc, add_mask, packed)
    jax.block_until_ready(out)
    assert out.shape == (B, S, D) and out.dtype == jnp.float32
    print("KERNEL_OK")
</pallas_src>

<mosaic_0001>
module attributes {stable_mosaic.version = 11 : i64} {
  func.func @decoder_kernel(%arg0: i32, %arg1: memref<1x8x32xf32, #tpu.memory_space<vmem>>, %arg2: memref<1x8x32xf32, #tpu.memory_space<vmem>>, %arg3: memref<1x8x8xf32, #tpu.memory_space<vmem>>, %arg4: memref<2x32xf32, #tpu.memory_space<vmem>>, %arg5: memref<32x96xbf16, #tpu.memory_space<vmem>>, %arg6: memref<32x32xbf16, #tpu.memory_space<vmem>>, %arg7: memref<2x32xf32, #tpu.memory_space<vmem>>, %arg8: memref<32x32xbf16, #tpu.memory_space<vmem>>, %arg9: memref<32x64xbf16, #tpu.memory_space<vmem>>, %arg10: memref<32x32xbf16, #tpu.memory_space<vmem>>, %arg11: memref<2x32xf32, #tpu.memory_space<vmem>>, %arg12: memref<32x128xbf16, #tpu.memory_space<vmem>>, %arg13: memref<1x128xf32, #tpu.memory_space<vmem>>, %arg14: memref<128x32xbf16, #tpu.memory_space<vmem>>, %arg15: memref<1x32xf32, #tpu.memory_space<vmem>>, %arg16: memref<1x8x32xf32, #tpu.memory_space<vmem>>) attributes {dimension_semantics = [#tpu.dimension_semantics<parallel>], iteration_bounds = array<i64: 2>, scalar_prefetch = 0 : i64, scratch_operands = 0 : i64, tpu.core_type = #tpu.core_type<tc>, window_params = [{transform_indices = @transform_0, window_bounds = array<i64: 1, 8, 32>}, {transform_indices = @transform_1, window_bounds = array<i64: 1, 8, 32>}, {transform_indices = @transform_2, window_bounds = array<i64: 1, 8, 8>}, {pipeline_mode = #tpu.pipeline_mode<synchronous>, transform_indices = @transform_3, window_bounds = array<i64: 2, 32>}, {pipeline_mode = #tpu.pipeline_mode<synchronous>, transform_indices = @transform_4, window_bounds = array<i64: 32, 96>}, {pipeline_mode = #tpu.pipeline_mode<synchronous>, transform_indices = @transform_5, window_bounds = array<i64: 32, 32>}, {pipeline_mode = #tpu.pipeline_mode<synchronous>, transform_indices = @transform_6, window_bounds = array<i64: 2, 32>}, {pipeline_mode = #tpu.pipeline_mode<synchronous>, transform_indices = @transform_7, window_bounds = array<i64: 32, 32>}, {pipeline_mode = #tpu.pipeline_mode<synchronous>, transform_indices = @transform_8, window_bounds = array<i64: 32, 64>}, {pipeline_mode = #tpu.pipeline_mode<synchronous>, transform_indices = @transform_9, window_bounds = array<i64: 32, 32>}, {pipeline_mode = #tpu.pipeline_mode<synchronous>, transform_indices = @transform_10, window_bounds = array<i64: 2, 32>}, {pipeline_mode = #tpu.pipeline_mode<synchronous>, transform_indices = @transform_11, window_bounds = array<i64: 32, 128>}, {pipeline_mode = #tpu.pipeline_mode<synchronous>, transform_indices = @transform_12, window_bounds = array<i64: 1, 128>}, {pipeline_mode = #tpu.pipeline_mode<synchronous>, transform_indices = @transform_13, window_bounds = array<i64: 128, 32>}, {pipeline_mode = #tpu.pipeline_mode<synchronous>, transform_indices = @transform_14, window_bounds = array<i64: 1, 32>}, {transform_indices = @transform_15, window_bounds = array<i64: 1, 8, 32>}]} {
    %c0 = arith.constant 0 : index
    %c0_0 = arith.constant 0 : index
    %c0_1 = arith.constant 0 : index
    %0 = vector.load %arg1[%c0, %c0_0, %c0_1] : memref<1x8x32xf32, #tpu.memory_space<vmem>>, vector<1x8x32xf32>
    %1 = vector.shape_cast %0 : vector<1x8x32xf32> to vector<8x32xf32>
    %c0_2 = arith.constant 0 : index
    %c0_3 = arith.constant 0 : index
    %c0_4 = arith.constant 0 : index
    %2 = vector.load %arg2[%c0_2, %c0_3, %c0_4] : memref<1x8x32xf32, #tpu.memory_space<vmem>>, vector<1x8x32xf32>
    %3 = vector.shape_cast %2 : vector<1x8x32xf32> to vector<8x32xf32>
    %c0_5 = arith.constant 0 : index
    %c0_6 = arith.constant 0 : index
    %c0_7 = arith.constant 0 : index
    %4 = vector.load %arg3[%c0_5, %c0_6, %c0_7] : memref<1x8x8xf32, #tpu.memory_space<vmem>>, vector<1x8x8xf32>
    %5 = vector.shape_cast %4 : vector<1x8x8xf32> to vector<8x8xf32>
    %c0_8 = arith.constant 0 : index
    %c0_9 = arith.constant 0 : index
    %6 = vector.load %arg4[%c0_8, %c0_9] : memref<2x32xf32, #tpu.memory_space<vmem>>, vector<1x32xf32>
    %c1 = arith.constant 1 : index
    %c0_10 = arith.constant 0 : index
    %7 = vector.load %arg4[%c1, %c0_10] : memref<2x32xf32, #tpu.memory_space<vmem>>, vector<1x32xf32>
    %cst = arith.constant dense<0.000000e+00> : vector<8xf32>
    %8 = vector.multi_reduction <add>, %1, %cst [1] : vector<8x32xf32> to vector<8xf32>
    %9 = vector.shape_cast %8 : vector<8xf32> to vector<8x1xf32>
    %cst_11 = arith.constant 3.200000e+01 : f32
    %10 = vector.broadcast %cst_11 : f32 to vector<8x1xf32>
    %11 = arith.divf %9, %10 : vector<8x1xf32>
    %12 = vector.broadcast %11 : vector<8x1xf32> to vector<8x32xf32>
    %13 = arith.subf %1, %12 : vector<8x32xf32>
    %14 = arith.mulf %13, %13 : vector<8x32xf32>
    %cst_12 = arith.constant dense<0.000000e+00> : vector<8xf32>
    %15 = vector.multi_reduction <add>, %14, %cst_12 [1] : vector<8x32xf32> to vector<8xf32>
    %16 = vector.shape_cast %15 : vector<8xf32> to vector<8x1xf32>
    %cst_13 = arith.constant 3.200000e+01 : f32
    %17 = vector.broadcast %cst_13 : f32 to vector<8x1xf32>
    %18 = arith.divf %16, %17 : vector<8x1xf32>
    %19 = vector.broadcast %11 : vector<8x1xf32> to vector<8x32xf32>
    %20 = arith.subf %1, %19 : vector<8x32xf32>
    %cst_14 = arith.constant 9.99999974E-6 : f32
    %21 = vector.broadcast %cst_14 : f32 to vector<8x1xf32>
    %22 = arith.addf %18, %21 : vector<8x1xf32>
    %23 = math.rsqrt %22 : vector<8x1xf32>
    %24 = vector.broadcast %23 : vector<8x1xf32> to vector<8x32xf32>
    %25 = arith.mulf %20, %24 : vector<8x32xf32>
    %26 = vector.broadcast %6 : vector<1x32xf32> to vector<8x32xf32>
    %27 = arith.mulf %25, %26 : vector<8x32xf32>
    %28 = vector.broadcast %7 : vector<1x32xf32> to vector<8x32xf32>
    %29 = arith.addf %27, %28 : vector<8x32xf32>
    %30 = arith.truncf %29 : vector<8x32xf32> to vector<8x32xbf16>
    %c0_15 = arith.constant 0 : index
    %c0_16 = arith.constant 0 : index
    %31 = vector.load %arg5[%c0_15, %c0_16] : memref<32x96xbf16, #tpu.memory_space<vmem>>, vector<32x96xbf16>
    %cst_17 = arith.constant dense<0.000000e+00> : vector<8x96xf32>
    %32 = tpu.matmul %30, %31, %cst_17 {dimension_numbers = #tpu.dot_dimension_numbers<[1], [0], [0], [1], [0, 0, 1, 1], [], []>} : vector<8x32xbf16>, vector<32x96xbf16>, vector<8x96xf32> -> vector<8x96xf32>
    %33 = vector.extract_strided_slice %32 {offsets = [0, 0], sizes = [8, 32], strides = [1, 1]} : vector<8x96xf32> to vector<8x32xf32>
    %34 = vector.extract_strided_slice %32 {offsets = [0, 32], sizes = [8, 32], strides = [1, 1]} : vector<8x96xf32> to vector<8x32xf32>
    %35 = vector.extract_strided_slice %32 {offsets = [0, 64], sizes = [8, 32], strides = [1, 1]} : vector<8x96xf32> to vector<8x32xf32>
    %36 = vector.extract_strided_slice %33 {offsets = [0, 0], sizes = [8, 8], strides = [1, 1]} : vector<8x32xf32> to vector<8x8xf32>
    %37 = arith.truncf %36 : vector<8x8xf32> to vector<8x8xbf16>
    %38 = vector.extract_strided_slice %34 {offsets = [0, 0], sizes = [8, 8], strides = [1, 1]} : vector<8x32xf32> to vector<8x8xf32>
    %39 = arith.truncf %38 : vector<8x8xf32> to vector<8x8xbf16>
    %40 = vector.extract_strided_slice %35 {offsets = [0, 0], sizes = [8, 8], strides = [1, 1]} : vector<8x32xf32> to vector<8x8xf32>
    %41 = arith.truncf %40 : vector<8x8xf32> to vector<8x8xbf16>
    %cst_18 = arith.constant dense<0.000000e+00> : vector<8x8xf32>
    %42 = tpu.matmul %37, %39, %cst_18 {dimension_numbers = #tpu.dot_dimension_numbers<[1], [1], [0], [0], [0, 0, 1, 0], [], []>} : vector<8x8xbf16>, vector<8x8xbf16>, vector<8x8xf32> -> vector<8x8xf32>
    %43 = arith.addf %42, %5 : vector<8x8xf32>
    %cst_19 = arith.constant dense<0xFF800000> : vector<8xf32>
    %44 = vector.multi_reduction <maximumf>, %43, %cst_19 [1] : vector<8x8xf32> to vector<8xf32>
    %45 = vector.shape_cast %44 : vector<8xf32> to vector<8x1xf32>
    %46 = vector.broadcast %45 : vector<8x1xf32> to vector<8x8xf32>
    %47 = arith.subf %43, %46 : vector<8x8xf32>
    %48 = math.exp %47 : vector<8x8xf32>
    %cst_20 = arith.constant dense<0.000000e+00> : vector<8xf32>
    %49 = vector.multi_reduction <add>, %48, %cst_20 [1] : vector<8x8xf32> to vector<8xf32>
    %50 = vector.shape_cast %49 : vector<8xf32> to vector<8x1xf32>
    %51 = tpu.reciprocal %50 {approx = true} : vector<8x1xf32> -> vector<8x1xf32>
    %52 = vector.broadcast %51 : vector<8x1xf32> to vector<8x8xf32>
    %53 = arith.mulf %48, %52 : vector<8x8xf32>
    %54 = arith.truncf %53 : vector<8x8xf32> to vector<8x8xbf16>
    %cst_21 = arith.constant dense<0.000000e+00> : vector<8x8xf32>
    %55 = tpu.matmul %54, %41, %cst_21 {dimension_numbers = #tpu.dot_dimension_numbers<[1], [0], [0], [1], [0, 0, 1, 1], [], []>} : vector<8x8xbf16>, vector<8x8xbf16>, vector<8x8xf32> -> vector<8x8xf32>
    %56 = vector.extract_strided_slice %33 {offsets = [0, 8], sizes = [8, 8], strides = [1, 1]} : vector<8x32xf32> to vector<8x8xf32>
    %57 = arith.truncf %56 : vector<8x8xf32> to vector<8x8xbf16>
    %58 = vector.extract_strided_slice %34 {offsets = [0, 8], sizes = [8, 8], strides = [1, 1]} : vector<8x32xf32> to vector<8x8xf32>
    %59 = arith.truncf %58 : vector<8x8xf32> to vector<8x8xbf16>
    %60 = vector.extract_strided_slice %35 {offsets = [0, 8], sizes = [8, 8], strides = [1, 1]} : vector<8x32xf32> to vector<8x8xf32>
    %61 = arith.truncf %60 : vector<8x8xf32> to vector<8x8xbf16>
    %cst_22 = arith.constant dense<0.000000e+00> : vector<8x8xf32>
    %62 = tpu.matmul %57, %59, %cst_22 {dimension_numbers = #tpu.dot_dimension_numbers<[1], [1], [0], [0], [0, 0, 1, 0], [], []>} : vector<8x8xbf16>, vector<8x8xbf16>, vector<8x8xf32> -> vector<8x8xf32>
    %63 = arith.addf %62, %5 : vector<8x8xf32>
    %cst_23 = arith.constant dense<0xFF800000> : vector<8xf32>
    %64 = vector.multi_reduction <maximumf>, %63, %cst_23 [1] : vector<8x8xf32> to vector<8xf32>
    %65 = vector.shape_cast %64 : vector<8xf32> to vector<8x1xf32>
    %66 = vector.broadcast %65 : vector<8x1xf32> to vector<8x8xf32>
    %67 = arith.subf %63, %66 : vector<8x8xf32>
    %68 = math.exp %67 : vector<8x8xf32>
    %cst_24 = arith.constant dense<0.000000e+00> : vector<8xf32>
    %69 = vector.multi_reduction <add>, %68, %cst_24 [1] : vector<8x8xf32> to vector<8xf32>
    %70 = vector.shape_cast %69 : vector<8xf32> to vector<8x1xf32>
    %71 = tpu.reciprocal %70 {approx = true} : vector<8x1xf32> -> vector<8x1xf32>
    %72 = vector.broadcast %71 : vector<8x1xf32> to vector<8x8xf32>
    %73 = arith.mulf %68, %72 : vector<8x8xf32>
    %74 = arith.truncf %73 : vector<8x8xf32> to vector<8x8xbf16>
    %cst_25 = arith.constant dense<0.000000e+00> : vector<8x8xf32>
    %75 = tpu.matmul %74, %61, %cst_25 {dimension_numbers = #tpu.dot_dimension_numbers<[1], [0], [0], [1], [0, 0, 1, 1], [], []>} : vector<8x8xbf16>, vector<8x8xbf16>, vector<8x8xf32> -> vector<8x8xf32>
    %76 = vector.extract_strided_slice %33 {offsets = [0, 16], sizes = [8, 8], strides = [1, 1]} : vector<8x32xf32> to vector<8x8xf32>
    %77 = arith.truncf %76 : vector<8x8xf32> to vector<8x8xbf16>
    %78 = vector.extract_strided_slice %34 {offsets = [0, 16], sizes = [8, 8], strides = [1, 1]} : vector<8x32xf32> to vector<8x8xf32>
    %79 = arith.truncf %78 : vector<8x8xf32> to vector<8x8xbf16>
    %80 = vector.extract_strided_slice %35 {offsets = [0, 16], sizes = [8, 8], strides = [1, 1]} : vector<8x32xf32> to vector<8x8xf32>
    %81 = arith.truncf %80 : vector<8x8xf32> to vector<8x8xbf16>
    %cst_26 = arith.constant dense<0.000000e+00> : vector<8x8xf32>
    %82 = tpu.matmul %77, %79, %cst_26 {dimension_numbers = #tpu.dot_dimension_numbers<[1], [1], [0], [0], [0, 0, 1, 0], [], []>} : vector<8x8xbf16>, vector<8x8xbf16>, vector<8x8xf32> -> vector<8x8xf32>
    %83 = arith.addf %82, %5 : vector<8x8xf32>
    %cst_27 = arith.constant dense<0xFF800000> : vector<8xf32>
    %84 = vector.multi_reduction <maximumf>, %83, %cst_27 [1] : vector<8x8xf32> to vector<8xf32>
    %85 = vector.shape_cast %84 : vector<8xf32> to vector<8x1xf32>
    %86 = vector.broadcast %85 : vector<8x1xf32> to vector<8x8xf32>
    %87 = arith.subf %83, %86 : vector<8x8xf32>
    %88 = math.exp %87 : vector<8x8xf32>
    %cst_28 = arith.constant dense<0.000000e+00> : vector<8xf32>
    %89 = vector.multi_reduction <add>, %88, %cst_28 [1] : vector<8x8xf32> to vector<8xf32>
    %90 = vector.shape_cast %89 : vector<8xf32> to vector<8x1xf32>
    %91 = tpu.reciprocal %90 {approx = true} : vector<8x1xf32> -> vector<8x1xf32>
    %92 = vector.broadcast %91 : vector<8x1xf32> to vector<8x8xf32>
    %93 = arith.mulf %88, %92 : vector<8x8xf32>
    %94 = arith.truncf %93 : vector<8x8xf32> to vector<8x8xbf16>
    %cst_29 = arith.constant dense<0.000000e+00> : vector<8x8xf32>
    %95 = tpu.matmul %94, %81, %cst_29 {dimension_numbers = #tpu.dot_dimension_numbers<[1], [0], [0], [1], [0, 0, 1, 1], [], []>} : vector<8x8xbf16>, vector<8x8xbf16>, vector<8x8xf32> -> vector<8x8xf32>
    %96 = vector.extract_strided_slice %33 {offsets = [0, 24], sizes = [8, 8], strides = [1, 1]} : vector<8x32xf32> to vector<8x8xf32>
    %97 = arith.truncf %96 : vector<8x8xf32> to vector<8x8xbf16>
    %98 = vector.extract_strided_slice %34 {offsets = [0, 24], sizes = [8, 8], strides = [1, 1]} : vector<8x32xf32> to vector<8x8xf32>
    %99 = arith.truncf %98 : vector<8x8xf32> to vector<8x8xbf16>
    %100 = vector.extract_strided_slice %35 {offsets = [0, 24], sizes = [8, 8], strides = [1, 1]} : vector<8x32xf32> to vector<8x8xf32>
    %101 = arith.truncf %100 : vector<8x8xf32> to vector<8x8xbf16>
    %cst_30 = arith.constant dense<0.000000e+00> : vector<8x8xf32>
    %102 = tpu.matmul %97, %99, %cst_30 {dimension_numbers = #tpu.dot_dimension_numbers<[1], [1], [0], [0], [0, 0, 1, 0], [], []>} : vector<8x8xbf16>, vector<8x8xbf16>, vector<8x8xf32> -> vector<8x8xf32>
    %103 = arith.addf %102, %5 : vector<8x8xf32>
    %cst_31 = arith.constant dense<0xFF800000> : vector<8xf32>
    %104 = vector.multi_reduction <maximumf>, %103, %cst_31 [1] : vector<8x8xf32> to vector<8xf32>
    %105 = vector.shape_cast %104 : vector<8xf32> to vector<8x1xf32>
    %106 = vector.broadcast %105 : vector<8x1xf32> to vector<8x8xf32>
    %107 = arith.subf %103, %106 : vector<8x8xf32>
    %108 = math.exp %107 : vector<8x8xf32>
    %cst_32 = arith.constant dense<0.000000e+00> : vector<8xf32>
    %109 = vector.multi_reduction <add>, %108, %cst_32 [1] : vector<8x8xf32> to vector<8xf32>
    %110 = vector.shape_cast %109 : vector<8xf32> to vector<8x1xf32>
    %111 = tpu.reciprocal %110 {approx = true} : vector<8x1xf32> -> vector<8x1xf32>
    %112 = vector.broadcast %111 : vector<8x1xf32> to vector<8x8xf32>
    %113 = arith.mulf %108, %112 : vector<8x8xf32>
    %114 = arith.truncf %113 : vector<8x8xf32> to vector<8x8xbf16>
    %cst_33 = arith.constant dense<0.000000e+00> : vector<8x8xf32>
    %115 = tpu.matmul %114, %101, %cst_33 {dimension_numbers = #tpu.dot_dimension_numbers<[1], [0], [0], [1], [0, 0, 1, 1], [], []>} : vector<8x8xbf16>, vector<8x8xbf16>, vector<8x8xf32> -> vector<8x8xf32>
    %116 = tpu.concatenate %55, %75, %95, %115 in 1 : vector<8x8xf32>, vector<8x8xf32>, vector<8x8xf32>, vector<8x8xf32> -> vector<8x32xf32>
    %117 = arith.truncf %116 : vector<8x32xf32> to vector<8x32xbf16>
    %c0_34 = arith.constant 0 : index
    %c0_35 = arith.constant 0 : index
    %118 = vector.load %arg6[%c0_34, %c0_35] : memref<32x32xbf16, #tpu.memory_space<vmem>>, vector<32x32xbf16>
    %cst_36 = arith.constant dense<0.000000e+00> : vector<8x32xf32>
    %119 = tpu.matmul %117, %118, %cst_36 {dimension_numbers = #tpu.dot_dimension_numbers<[1], [0], [0], [1], [0, 0, 1, 1], [], []>} : vector<8x32xbf16>, vector<32x32xbf16>, vector<8x32xf32> -> vector<8x32xf32>
    %120 = arith.addf %1, %119 : vector<8x32xf32>
    %c0_37 = arith.constant 0 : index
    %c0_38 = arith.constant 0 : index
    %121 = vector.load %arg7[%c0_37, %c0_38] : memref<2x32xf32, #tpu.memory_space<vmem>>, vector<1x32xf32>
    %c1_39 = arith.constant 1 : index
    %c0_40 = arith.constant 0 : index
    %122 = vector.load %arg7[%c1_39, %c0_40] : memref<2x32xf32, #tpu.memory_space<vmem>>, vector<1x32xf32>
    %cst_41 = arith.constant dense<0.000000e+00> : vector<8xf32>
    %123 = vector.multi_reduction <add>, %120, %cst_41 [1] : vector<8x32xf32> to vector<8xf32>
    %124 = vector.shape_cast %123 : vector<8xf32> to vector<8x1xf32>
    %cst_42 = arith.constant 3.200000e+01 : f32
    %125 = vector.broadcast %cst_42 : f32 to vector<8x1xf32>
    %126 = arith.divf %124, %125 : vector<8x1xf32>
    %127 = vector.broadcast %126 : vector<8x1xf32> to vector<8x32xf32>
    %128 = arith.subf %120, %127 : vector<8x32xf32>
    %129 = arith.mulf %128, %128 : vector<8x32xf32>
    %cst_43 = arith.constant dense<0.000000e+00> : vector<8xf32>
    %130 = vector.multi_reduction <add>, %129, %cst_43 [1] : vector<8x32xf32> to vector<8xf32>
    %131 = vector.shape_cast %130 : vector<8xf32> to vector<8x1xf32>
    %cst_44 = arith.constant 3.200000e+01 : f32
    %132 = vector.broadcast %cst_44 : f32 to vector<8x1xf32>
    %133 = arith.divf %131, %132 : vector<8x1xf32>
    %134 = vector.broadcast %126 : vector<8x1xf32> to vector<8x32xf32>
    %135 = arith.subf %120, %134 : vector<8x32xf32>
    %cst_45 = arith.constant 9.99999974E-6 : f32
    %136 = vector.broadcast %cst_45 : f32 to vector<8x1xf32>
    %137 = arith.addf %133, %136 : vector<8x1xf32>
    %138 = math.rsqrt %137 : vector<8x1xf32>
    %139 = vector.broadcast %138 : vector<8x1xf32> to vector<8x32xf32>
    %140 = arith.mulf %135, %139 : vector<8x32xf32>
    %141 = vector.broadcast %121 : vector<1x32xf32> to vector<8x32xf32>
    %142 = arith.mulf %140, %141 : vector<8x32xf32>
    %143 = vector.broadcast %122 : vector<1x32xf32> to vector<8x32xf32>
    %144 = arith.addf %142, %143 : vector<8x32xf32>
    %145 = arith.truncf %144 : vector<8x32xf32> to vector<8x32xbf16>
    %c0_46 = arith.constant 0 : index
    %c0_47 = arith.constant 0 : index
    %146 = vector.load %arg8[%c0_46, %c0_47] : memref<32x32xbf16, #tpu.memory_space<vmem>>, vector<32x32xbf16>
    %cst_48 = arith.constant dense<0.000000e+00> : vector<8x32xf32>
    %147 = tpu.matmul %145, %146, %cst_48 {dimension_numbers = #tpu.dot_dimension_numbers<[1], [0], [0], [1], [0, 0, 1, 1], [], []>} : vector<8x32xbf16>, vector<32x32xbf16>, vector<8x32xf32> -> vector<8x32xf32>
    %148 = arith.truncf %3 : vector<8x32xf32> to vector<8x32xbf16>
    %c0_49 = arith.constant 0 : index
    %c0_50 = arith.constant 0 : index
    %149 = vector.load %arg9[%c0_49, %c0_50] : memref<32x64xbf16, #tpu.memory_space<vmem>>, vector<32x64xbf16>
    %cst_51 = arith.constant dense<0.000000e+00> : vector<8x64xf32>
    %150 = tpu.matmul %148, %149, %cst_51 {dimension_numbers = #tpu.dot_dimension_numbers<[1], [0], [0], [1], [0, 0, 1, 1], [], []>} : vector<8x32xbf16>, vector<32x64xbf16>, vector<8x64xf32> -> vector<8x64xf32>
    %151 = vector.extract_strided_slice %150 {offsets = [0, 0], sizes = [8, 32], strides = [1, 1]} : vector<8x64xf32> to vector<8x32xf32>
    %152 = vector.extract_strided_slice %150 {offsets = [0, 32], sizes = [8, 32], strides = [1, 1]} : vector<8x64xf32> to vector<8x32xf32>
    %153 = vector.extract_strided_slice %147 {offsets = [0, 0], sizes = [8, 8], strides = [1, 1]} : vector<8x32xf32> to vector<8x8xf32>
    %154 = arith.truncf %153 : vector<8x8xf32> to vector<8x8xbf16>
    %155 = vector.extract_strided_slice %151 {offsets = [0, 0], sizes = [8, 8], strides = [1, 1]} : vector<8x32xf32> to vector<8x8xf32>
    %156 = arith.truncf %155 : vector<8x8xf32> to vector<8x8xbf16>
    %157 = vector.extract_strided_slice %152 {offsets = [0, 0], sizes = [8, 8], strides = [1, 1]} : vector<8x32xf32> to vector<8x8xf32>
    %158 = arith.truncf %157 : vector<8x8xf32> to vector<8x8xbf16>
    %cst_52 = arith.constant dense<0.000000e+00> : vector<8x8xf32>
    %159 = tpu.matmul %154, %156, %cst_52 {dimension_numbers = #tpu.dot_dimension_numbers<[1], [1], [0], [0], [0, 0, 1, 0], [], []>} : vector<8x8xbf16>, vector<8x8xbf16>, vector<8x8xf32> -> vector<8x8xf32>
    %cst_53 = arith.constant dense<0xFF800000> : vector<8xf32>
    %160 = vector.multi_reduction <maximumf>, %159, %cst_53 [1] : vector<8x8xf32> to vector<8xf32>
    %161 = vector.shape_cast %160 : vector<8xf32> to vector<8x1xf32>
    %162 = vector.broadcast %161 : vector<8x1xf32> to vector<8x8xf32>
    %163 = arith.subf %159, %162 : vector<8x8xf32>
    %164 = math.exp %163 : vector<8x8xf32>
    %cst_54 = arith.constant dense<0.000000e+00> : vector<8xf32>
    %165 = vector.multi_reduction <add>, %164, %cst_54 [1] : vector<8x8xf32> to vector<8xf32>
    %166 = vector.shape_cast %165 : vector<8xf32> to vector<8x1xf32>
    %167 = tpu.reciprocal %166 {approx = true} : vector<8x1xf32> -> vector<8x1xf32>
    %168 = vector.broadcast %167 : vector<8x1xf32> to vector<8x8xf32>
    %169 = arith.mulf %164, %168 : vector<8x8xf32>
    %170 = arith.truncf %169 : vector<8x8xf32> to vector<8x8xbf16>
    %cst_55 = arith.constant dense<0.000000e+00> : vector<8x8xf32>
    %171 = tpu.matmul %170, %158, %cst_55 {dimension_numbers = #tpu.dot_dimension_numbers<[1], [0], [0], [1], [0, 0, 1, 1], [], []>} : vector<8x8xbf16>, vector<8x8xbf16>, vector<8x8xf32> -> vector<8x8xf32>
    %172 = vector.extract_strided_slice %147 {offsets = [0, 8], sizes = [8, 8], strides = [1, 1]} : vector<8x32xf32> to vector<8x8xf32>
    %173 = arith.truncf %172 : vector<8x8xf32> to vector<8x8xbf16>
    %174 = vector.extract_strided_slice %151 {offsets = [0, 8], sizes = [8, 8], strides = [1, 1]} : vector<8x32xf32> to vector<8x8xf32>
    %175 = arith.truncf %174 : vector<8x8xf32> to vector<8x8xbf16>
    %176 = vector.extract_strided_slice %152 {offsets = [0, 8], sizes = [8, 8], strides = [1, 1]} : vector<8x32xf32> to vector<8x8xf32>
    %177 = arith.truncf %176 : vector<8x8xf32> to vector<8x8xbf16>
    %cst_56 = arith.constant dense<0.000000e+00> : vector<8x8xf32>
    %178 = tpu.matmul %173, %175, %cst_56 {dimension_numbers = #tpu.dot_dimension_numbers<[1], [1], [0], [0], [0, 0, 1, 0], [], []>} : vector<8x8xbf16>, vector<8x8xbf16>, vector<8x8xf32> -> vector<8x8xf32>
    %cst_57 = arith.constant dense<0xFF800000> : vector<8xf32>
    %179 = vector.multi_reduction <maximumf>, %178, %cst_57 [1] : vector<8x8xf32> to vector<8xf32>
    %180 = vector.shape_cast %179 : vector<8xf32> to vector<8x1xf32>
    %181 = vector.broadcast %180 : vector<8x1xf32> to vector<8x8xf32>
    %182 = arith.subf %178, %181 : vector<8x8xf32>
    %183 = math.exp %182 : vector<8x8xf32>
    %cst_58 = arith.constant dense<0.000000e+00> : vector<8xf32>
    %184 = vector.multi_reduction <add>, %183, %cst_58 [1] : vector<8x8xf32> to vector<8xf32>
    %185 = vector.shape_cast %184 : vector<8xf32> to vector<8x1xf32>
    %186 = tpu.reciprocal %185 {approx = true} : vector<8x1xf32> -> vector<8x1xf32>
    %187 = vector.broadcast %186 : vector<8x1xf32> to vector<8x8xf32>
    %188 = arith.mulf %183, %187 : vector<8x8xf32>
    %189 = arith.truncf %188 : vector<8x8xf32> to vector<8x8xbf16>
    %cst_59 = arith.constant dense<0.000000e+00> : vector<8x8xf32>
    %190 = tpu.matmul %189, %177, %cst_59 {dimension_numbers = #tpu.dot_dimension_numbers<[1], [0], [0], [1], [0, 0, 1, 1], [], []>} : vector<8x8xbf16>, vector<8x8xbf16>, vector<8x8xf32> -> vector<8x8xf32>
    %191 = vector.extract_strided_slice %147 {offsets = [0, 16], sizes = [8, 8], strides = [1, 1]} : vector<8x32xf32> to vector<8x8xf32>
    %192 = arith.truncf %191 : vector<8x8xf32> to vector<8x8xbf16>
    %193 = vector.extract_strided_slice %151 {offsets = [0, 16], sizes = [8, 8], strides = [1, 1]} : vector<8x32xf32> to vector<8x8xf32>
    %194 = arith.truncf %193 : vector<8x8xf32> to vector<8x8xbf16>
    %195 = vector.extract_strided_slice %152 {offsets = [0, 16], sizes = [8, 8], strides = [1, 1]} : vector<8x32xf32> to vector<8x8xf32>
    %196 = arith.truncf %195 : vector<8x8xf32> to vector<8x8xbf16>
    %cst_60 = arith.constant dense<0.000000e+00> : vector<8x8xf32>
    %197 = tpu.matmul %192, %194, %cst_60 {dimension_numbers = #tpu.dot_dimension_numbers<[1], [1], [0], [0], [0, 0, 1, 0], [], []>} : vector<8x8xbf16>, vector<8x8xbf16>, vector<8x8xf32> -> vector<8x8xf32>
    %cst_61 = arith.constant dense<0xFF800000> : vector<8xf32>
    %198 = vector.multi_reduction <maximumf>, %197, %cst_61 [1] : vector<8x8xf32> to vector<8xf32>
    %199 = vector.shape_cast %198 : vector<8xf32> to vector<8x1xf32>
    %200 = vector.broadcast %199 : vector<8x1xf32> to vector<8x8xf32>
    %201 = arith.subf %197, %200 : vector<8x8xf32>
    %202 = math.exp %201 : vector<8x8xf32>
    %cst_62 = arith.constant dense<0.000000e+00> : vector<8xf32>
    %203 = vector.multi_reduction <add>, %202, %cst_62 [1] : vector<8x8xf32> to vector<8xf32>
    %204 = vector.shape_cast %203 : vector<8xf32> to vector<8x1xf32>
    %205 = tpu.reciprocal %204 {approx = true} : vector<8x1xf32> -> vector<8x1xf32>
    %206 = vector.broadcast %205 : vector<8x1xf32> to vector<8x8xf32>
    %207 = arith.mulf %202, %206 : vector<8x8xf32>
    %208 = arith.truncf %207 : vector<8x8xf32> to vector<8x8xbf16>
    %cst_63 = arith.constant dense<0.000000e+00> : vector<8x8xf32>
    %209 = tpu.matmul %208, %196, %cst_63 {dimension_numbers = #tpu.dot_dimension_numbers<[1], [0], [0], [1], [0, 0, 1, 1], [], []>} : vector<8x8xbf16>, vector<8x8xbf16>, vector<8x8xf32> -> vector<8x8xf32>
    %210 = vector.extract_strided_slice %147 {offsets = [0, 24], sizes = [8, 8], strides = [1, 1]} : vector<8x32xf32> to vector<8x8xf32>
    %211 = arith.truncf %210 : vector<8x8xf32> to vector<8x8xbf16>
    %212 = vector.extract_strided_slice %151 {offsets = [0, 24], sizes = [8, 8], strides = [1, 1]} : vector<8x32xf32> to vector<8x8xf32>
    %213 = arith.truncf %212 : vector<8x8xf32> to vector<8x8xbf16>
    %214 = vector.extract_strided_slice %152 {offsets = [0, 24], sizes = [8, 8], strides = [1, 1]} : vector<8x32xf32> to vector<8x8xf32>
    %215 = arith.truncf %214 : vector<8x8xf32> to vector<8x8xbf16>
    %cst_64 = arith.constant dense<0.000000e+00> : vector<8x8xf32>
    %216 = tpu.matmul %211, %213, %cst_64 {dimension_numbers = #tpu.dot_dimension_numbers<[1], [1], [0], [0], [0, 0, 1, 0], [], []>} : vector<8x8xbf16>, vector<8x8xbf16>, vector<8x8xf32> -> vector<8x8xf32>
    %cst_65 = arith.constant dense<0xFF800000> : vector<8xf32>
    %217 = vector.multi_reduction <maximumf>, %216, %cst_65 [1] : vector<8x8xf32> to vector<8xf32>
    %218 = vector.shape_cast %217 : vector<8xf32> to vector<8x1xf32>
    %219 = vector.broadcast %218 : vector<8x1xf32> to vector<8x8xf32>
    %220 = arith.subf %216, %219 : vector<8x8xf32>
    %221 = math.exp %220 : vector<8x8xf32>
    %cst_66 = arith.constant dense<0.000000e+00> : vector<8xf32>
    %222 = vector.multi_reduction <add>, %221, %cst_66 [1] : vector<8x8xf32> to vector<8xf32>
    %223 = vector.shape_cast %222 : vector<8xf32> to vector<8x1xf32>
    %224 = tpu.reciprocal %223 {approx = true} : vector<8x1xf32> -> vector<8x1xf32>
    %225 = vector.broadcast %224 : vector<8x1xf32> to vector<8x8xf32>
    %226 = arith.mulf %221, %225 : vector<8x8xf32>
    %227 = arith.truncf %226 : vector<8x8xf32> to vector<8x8xbf16>
    %cst_67 = arith.constant dense<0.000000e+00> : vector<8x8xf32>
    %228 = tpu.matmul %227, %215, %cst_67 {dimension_numbers = #tpu.dot_dimension_numbers<[1], [0], [0], [1], [0, 0, 1, 1], [], []>} : vector<8x8xbf16>, vector<8x8xbf16>, vector<8x8xf32> -> vector<8x8xf32>
    %229 = tpu.concatenate %171, %190, %209, %228 in 1 : vector<8x8xf32>, vector<8x8xf32>, vector<8x8xf32>, vector<8x8xf32> -> vector<8x32xf32>
    %230 = arith.truncf %229 : vector<8x32xf32> to vector<8x32xbf16>
    %c0_68 = arith.constant 0 : index
    %c0_69 = arith.constant 0 : index
    %231 = vector.load %arg10[%c0_68, %c0_69] : memref<32x32xbf16, #tpu.memory_space<vmem>>, vector<32x32xbf16>
    %cst_70 = arith.constant dense<0.000000e+00> : vector<8x32xf32>
    %232 = tpu.matmul %230, %231, %cst_70 {dimension_numbers = #tpu.dot_dimension_numbers<[1], [0], [0], [1], [0, 0, 1, 1], [], []>} : vector<8x32xbf16>, vector<32x32xbf16>, vector<8x32xf32> -> vector<8x32xf32>
    %233 = arith.addf %120, %232 : vector<8x32xf32>
    %c0_71 = arith.constant 0 : index
    %c0_72 = arith.constant 0 : index
    %234 = vector.load %arg11[%c0_71, %c0_72] : memref<2x32xf32, #tpu.memory_space<vmem>>, vector<1x32xf32>
    %c1_73 = arith.constant 1 : index
    %c0_74 = arith.constant 0 : index
    %235 = vector.load %arg11[%c1_73, %c0_74] : memref<2x32xf32, #tpu.memory_space<vmem>>, vector<1x32xf32>
    %cst_75 = arith.constant dense<0.000000e+00> : vector<8xf32>
    %236 = vector.multi_reduction <add>, %233, %cst_75 [1] : vector<8x32xf32> to vector<8xf32>
    %237 = vector.shape_cast %236 : vector<8xf32> to vector<8x1xf32>
    %cst_76 = arith.constant 3.200000e+01 : f32
    %238 = vector.broadcast %cst_76 : f32 to vector<8x1xf32>
    %239 = arith.divf %237, %238 : vector<8x1xf32>
    %240 = vector.broadcast %239 : vector<8x1xf32> to vector<8x32xf32>
    %241 = arith.subf %233, %240 : vector<8x32xf32>
    %242 = arith.mulf %241, %241 : vector<8x32xf32>
    %cst_77 = arith.constant dense<0.000000e+00> : vector<8xf32>
    %243 = vector.multi_reduction <add>, %242, %cst_77 [1] : vector<8x32xf32> to vector<8xf32>
    %244 = vector.shape_cast %243 : vector<8xf32> to vector<8x1xf32>
    %cst_78 = arith.constant 3.200000e+01 : f32
    %245 = vector.broadcast %cst_78 : f32 to vector<8x1xf32>
    %246 = arith.divf %244, %245 : vector<8x1xf32>
    %247 = vector.broadcast %239 : vector<8x1xf32> to vector<8x32xf32>
    %248 = arith.subf %233, %247 : vector<8x32xf32>
    %cst_79 = arith.constant 9.99999974E-6 : f32
    %249 = vector.broadcast %cst_79 : f32 to vector<8x1xf32>
    %250 = arith.addf %246, %249 : vector<8x1xf32>
    %251 = math.rsqrt %250 : vector<8x1xf32>
    %252 = vector.broadcast %251 : vector<8x1xf32> to vector<8x32xf32>
    %253 = arith.mulf %248, %252 : vector<8x32xf32>
    %254 = vector.broadcast %234 : vector<1x32xf32> to vector<8x32xf32>
    %255 = arith.mulf %253, %254 : vector<8x32xf32>
    %256 = vector.broadcast %235 : vector<1x32xf32> to vector<8x32xf32>
    %257 = arith.addf %255, %256 : vector<8x32xf32>
    %258 = arith.truncf %257 : vector<8x32xf32> to vector<8x32xbf16>
    %c0_80 = arith.constant 0 : index
    %c0_81 = arith.constant 0 : index
    %259 = vector.load %arg12[%c0_80, %c0_81] : memref<32x128xbf16, #tpu.memory_space<vmem>>, vector<32x128xbf16>
    %cst_82 = arith.constant dense<0.000000e+00> : vector<8x128xf32>
    %260 = tpu.matmul %258, %259, %cst_82 {dimension_numbers = #tpu.dot_dimension_numbers<[1], [0], [0], [1], [0, 0, 1, 1], [], []>} : vector<8x32xbf16>, vector<32x128xbf16>, vector<8x128xf32> -> vector<8x128xf32>
    %c0_83 = arith.constant 0 : index
    %c0_84 = arith.constant 0 : index
    %261 = vector.load %arg13[%c0_83, %c0_84] : memref<1x128xf32, #tpu.memory_space<vmem>>, vector<1x128xf32>
    %262 = vector.broadcast %261 : vector<1x128xf32> to vector<8x128xf32>
    %263 = arith.addf %260, %262 : vector<8x128xf32>
    %cst_85 = arith.constant 5.000000e-01 : f32
    %264 = vector.broadcast %cst_85 : f32 to vector<8x128xf32>
    %265 = arith.mulf %264, %263 : vector<8x128xf32>
    %cst_86 = arith.constant 4.471500e-02 : f32
    %266 = vector.broadcast %cst_86 : f32 to vector<8x128xf32>
    %267 = arith.mulf %266, %263 : vector<8x128xf32>
    %268 = arith.mulf %267, %263 : vector<8x128xf32>
    %269 = arith.mulf %268, %263 : vector<8x128xf32>
    %270 = arith.addf %263, %269 : vector<8x128xf32>
    %cst_87 = arith.constant 0.797884583 : f32
    %271 = vector.broadcast %cst_87 : f32 to vector<8x128xf32>
    %272 = arith.mulf %271, %270 : vector<8x128xf32>
    %273 = math.tanh %272 : vector<8x128xf32>
    %cst_88 = arith.constant 1.000000e+00 : f32
    %274 = vector.broadcast %cst_88 : f32 to vector<8x128xf32>
    %275 = arith.addf %274, %273 : vector<8x128xf32>
    %276 = arith.mulf %265, %275 : vector<8x128xf32>
    %277 = arith.truncf %276 : vector<8x128xf32> to vector<8x128xbf16>
    %c0_89 = arith.constant 0 : index
    %c0_90 = arith.constant 0 : index
    %278 = vector.load %arg14[%c0_89, %c0_90] : memref<128x32xbf16, #tpu.memory_space<vmem>>, vector<128x32xbf16>
    %cst_91 = arith.constant dense<0.000000e+00> : vector<8x32xf32>
    %279 = tpu.matmul %277, %278, %cst_91 {dimension_numbers = #tpu.dot_dimension_numbers<[1], [0], [0], [1], [0, 0, 1, 1], [], []>} : vector<8x128xbf16>, vector<128x32xbf16>, vector<8x32xf32> -> vector<8x32xf32>
    %c0_92 = arith.constant 0 : index
    %c0_93 = arith.constant 0 : index
    %280 = vector.load %arg15[%c0_92, %c0_93] : memref<1x32xf32, #tpu.memory_space<vmem>>, vector<1x32xf32>
    %281 = vector.broadcast %280 : vector<1x32xf32> to vector<8x32xf32>
    %282 = arith.addf %279, %281 : vector<8x32xf32>
    %c0_94 = arith.constant 0 : index
    %c0_95 = arith.constant 0 : index
    %c0_96 = arith.constant 0 : index
    %283 = vector.load %arg16[%c0_94, %c0_95, %c0_96] : memref<1x8x32xf32, #tpu.memory_space<vmem>>, vector<1x8x32xf32>
    %284 = vector.shape_cast %283 : vector<1x8x32xf32> to vector<8x32xf32>
    %285 = vector.shape_cast %282 : vector<8x32xf32> to vector<1x8x32xf32>
    tpu.vector_store %arg16[%c0_94, %c0_95, %c0_96], %285 {strides = array<i32>} : memref<1x8x32xf32, #tpu.memory_space<vmem>>, vector<1x8x32xf32>,
    return
  }
  func.func @transform_0(%arg0: i32) -> (i32, i32, i32) {
    %c0_i32 = arith.constant 0 : i32
    %c0_i32_0 = arith.constant 0 : i32
    %c0_i32_1 = arith.constant 0 : i32
    return %arg0, %c0_i32, %c0_i32_0 : i32, i32, i32
  }
  func.func @transform_1(%arg0: i32) -> (i32, i32, i32) {
    %c0_i32 = arith.constant 0 : i32
    %c0_i32_0 = arith.constant 0 : i32
    %c0_i32_1 = arith.constant 0 : i32
    return %arg0, %c0_i32, %c0_i32_0 : i32, i32, i32
  }
  func.func @transform_2(%arg0: i32) -> (i32, i32, i32) {
    %c0_i32 = arith.constant 0 : i32
    %c0_i32_0 = arith.constant 0 : i32
    %c0_i32_1 = arith.constant 0 : i32
    return %arg0, %c0_i32, %c0_i32_0 : i32, i32, i32
  }
  func.func @transform_3(%arg0: i32) -> (i32, i32) {
    %c0_i32 = arith.constant 0 : i32
    %c0_i32_0 = arith.constant 0 : i32
    %c0_i32_1 = arith.constant 0 : i32
    return %c0_i32, %c0_i32_0 : i32, i32
  }
  func.func @transform_4(%arg0: i32) -> (i32, i32) {
    %c0_i32 = arith.constant 0 : i32
    %c0_i32_0 = arith.constant 0 : i32
    %c0_i32_1 = arith.constant 0 : i32
    return %c0_i32, %c0_i32_0 : i32, i32
  }
  func.func @transform_5(%arg0: i32) -> (i32, i32) {
    %c0_i32 = arith.constant 0 : i32
    %c0_i32_0 = arith.constant 0 : i32
    %c0_i32_1 = arith.constant 0 : i32
    return %c0_i32, %c0_i32_0 : i32, i32
  }
  func.func @transform_6(%arg0: i32) -> (i32, i32) {
    %c0_i32 = arith.constant 0 : i32
    %c0_i32_0 = arith.constant 0 : i32
    %c0_i32_1 = arith.constant 0 : i32
    return %c0_i32, %c0_i32_0 : i32, i32
  }
  func.func @transform_7(%arg0: i32) -> (i32, i32) {
    %c0_i32 = arith.constant 0 : i32
    %c0_i32_0 = arith.constant 0 : i32
    %c0_i32_1 = arith.constant 0 : i32
    return %c0_i32, %c0_i32_0 : i32, i32
  }
  func.func @transform_8(%arg0: i32) -> (i32, i32) {
    %c0_i32 = arith.constant 0 : i32
    %c0_i32_0 = arith.constant 0 : i32
    %c0_i32_1 = arith.constant 0 : i32
    return %c0_i32, %c0_i32_0 : i32, i32
  }
  func.func @transform_9(%arg0: i32) -> (i32, i32) {
    %c0_i32 = arith.constant 0 : i32
    %c0_i32_0 = arith.constant 0 : i32
    %c0_i32_1 = arith.constant 0 : i32
    return %c0_i32, %c0_i32_0 : i32, i32
  }
  func.func @transform_10(%arg0: i32) -> (i32, i32) {
    %c0_i32 = arith.constant 0 : i32
    %c0_i32_0 = arith.constant 0 : i32
    %c0_i32_1 = arith.constant 0 : i32
    return %c0_i32, %c0_i32_0 : i32, i32
  }
  func.func @transform_11(%arg0: i32) -> (i32, i32) {
    %c0_i32 = arith.constant 0 : i32
    %c0_i32_0 = arith.constant 0 : i32
    %c0_i32_1 = arith.constant 0 : i32
    return %c0_i32, %c0_i32_0 : i32, i32
  }
  func.func @transform_12(%arg0: i32) -> (i32, i32) {
    %c0_i32 = arith.constant 0 : i32
    %c0_i32_0 = arith.constant 0 : i32
    %c0_i32_1 = arith.constant 0 : i32
    return %c0_i32, %c0_i32_0 : i32, i32
  }
  func.func @transform_13(%arg0: i32) -> (i32, i32) {
    %c0_i32 = arith.constant 0 : i32
    %c0_i32_0 = arith.constant 0 : i32
    %c0_i32_1 = arith.constant 0 : i32
    return %c0_i32, %c0_i32_0 : i32, i32
  }
  func.func @transform_14(%arg0: i32) -> (i32, i32) {
    %c0_i32 = arith.constant 0 : i32
    %c0_i32_0 = arith.constant 0 : i32
    %c0_i32_1 = arith.constant 0 : i32
    return %c0_i32, %c0_i32_0 : i32, i32
  }
  func.func @transform_15(%arg0: i32) -> (i32, i32, i32) {
    %c0_i32 = arith.constant 0 : i32
    %c0_i32_0 = arith.constant 0 : i32
    %c0_i32_1 = arith.constant 0 : i32
    return %arg0, %c0_i32, %c0_i32_0 : i32, i32, i32
  }
}

</mosaic_0001>

<bundles_post_ra>
// kernel: decoder_forward.1
= control target key start
LH: loop header
LB: loop body
LE: loop exit
PB: predicated region body
PF: predicated region fallthrough
CT: control target
= control target key end

     0   :  { %s3464_s0 = inlined_call_operand.vmem [shape: f32[2,8,32], index: 0, kind: input, shape index: {}]   ;;  %s3465_s1 = inlined_call_operand.vmem [shape: f32[2,8,32], index: 1, kind: input, shape index: {}]   ;;  %s3466_s2 = inlined_call_operand.vmem [shape: f32[2,8,8], index: 2, kind: input, shape index: {}]   ;;  %s3467_s3 = inlined_call_operand.vmem [shape: f32[2,32], index: 3, kind: input, shape index: {}]   ;;  %s3468_s4 = inlined_call_operand.vmem [shape: bf16[32,96], index: 4, kind: input, shape index: {}]   ;;  %s3469_s5 = inlined_call_operand.vmem [shape: bf16[32,32], index: 5, kind: input, shape index: {}]   ;;  %s3470_s6 = inlined_call_operand.hbm [shape: f32[2,32], index: 6, kind: input, shape index: {}]   ;;  %s3471_s7 = inlined_call_operand.hbm [shape: bf16[32,32], index: 7, kind: input, shape index: {}]   ;;  %s3472_s8 = inlined_call_operand.hbm [shape: bf16[32,64], index: 8, kind: input, shape index: {}]   ;;  %s3473_s9 = inlined_call_operand.vmem [shape: bf16[32,32], index: 9, kind: input, shape index: {}]   ;;  %s3474_s10 = inlined_call_operand.vmem [shape: f32[2,32], index: 10, kind: input, shape index: {}]   ;;  %s3475_s11 = inlined_call_operand.hbm [shape: bf16[32,128], index: 11, kind: input, shape index: {}]   ;;  %s3476_s12 = inlined_call_operand.vmem [shape: f32[1,128], index: 12, kind: input, shape index: {}]   ;;  %s3477_s13 = inlined_call_operand.vmem [shape: bf16[128,32], index: 13, kind: input, shape index: {}]   ;;  %s3478_s14 = inlined_call_operand.vmem [shape: f32[1,32], index: 14, kind: input, shape index: {}]   ;;  %s3479_s15 = inlined_call_operand.hbm [shape: f32[2,8,32], index: 15, kind: output, shape index: {}]  }
   0x1   :  { %3493 = sst [smem:[#allocation23_spill]] %s3476_s12 }
   0x2   :  { %3494 = sst [smem:[#allocation24_spill]] %s3478_s14 }
   0x3   :  { %3495 = sst [smem:[#allocation25_spill]] %s3479_s15 }
   0x4   :  { %20 = vsyncpa [#allocation3], 0 }
   0x5   :  { %21 = vsyncpa [#allocation6], 0 }
   0x6   :  { %22 = vsyncpa [#allocation9], 0 }
   0x7   :  { %23 = vsyncpa [#allocation4], 0 }
   0x8   :  { %25 = vsyncpa [#allocation4 + $0x1], 0  ;;  %s2947_s18 = smov 0   ;;  %s2949_s19 = smov 0  }
   0x9   :  { %s2951_s20 = smov 0   ;;  %s2953_s21 = smov 0  }
   0xa LB: > { %3496 = sst [smem:[#allocation15_spill]] %s2830_s18  ;;  %s2968_s22 = sadd.s32 4294967295, %s2842_s21   ;;  %s2842_s21 = sphi %s2953_s21, %s3526_s21   ;;  %s2838_s20 = sphi %s2951_s20, %s3529_s20   ;;  %s2834_s19 = sphi %s2949_s19, %s3528_s19   ;;  %s2830_s18 = sphi %s2947_s18, %s3527_s18  }
   0xb   : > { %3497 = sst [smem:[#allocation16_spill]] %s2834_s19  ;;  %s2205_s23 = sadd.s32 4294967294, %s2842_s21  }
   0xc   : > { %3498 = sst [smem:[#allocation17_spill]] %s2838_s20  ;;  %s2972_s24 = sadd.s32 1, %s2842_s21  }
   0xd   : > { %3499 = sst [smem:[#allocation18_spill]] %s2842_s21  ;;  %s368_s25 = sadd.s32 1, %s2838_s20 }
   0xe   : > { %3500 = sst [smem:[#allocation19_spill]] %s2972_s24  ;;  %s365_s26 = ssub.s32 %s2842_s21, %s2972_s24 }
   0xf   : > { %p378_p0 = scmp.ne.s32.totalorder %s2838_s20, %s2834_s19  ;;  %p366_p1 = scmp.eq.s32.totalorder %s365_s26, 0 }
  0x10   : > { %p379_p2 = scmp.eq.s32.totalorder %s2968_s22, 1  ;;  %p384_p3 = scmp.ne.s32.totalorder %s2834_s19, %s2830_s18 }
  0x11   : > { %p385_p4 = scmp.eq.s32.totalorder %s2205_s23, 1  ;;  %p2206_p7 = scmp.ge.s32.totalorder %s2842_s21, 1 }
  0x12   : > { %s2983_s27 = scalar_select %p366_p1, %s2838_s20, %s368_s25  }
  0x13   : > { %p2985_p5 = por %p379_p2, %p378_p0  ;;  %p2989_p6 = por %p385_p4, %p384_p3 }
  0x14   : > { %3501 = sst [smem:[#allocation20_spill]] %s2983_s27  ;;  %p392_p8 = scmp.lt.s32.totalorder %s2842_s21, 3 }
  0x15   : > { %s3502_s28 = scalar_select %p2985_p5, 1, 0 }
  0x16   : > { %s3504_s29 = scalar_select %p2989_p6, 1, 0 }
  0x17   : > { %3503 = sst [smem:[#allocation21_spill]] %s3502_s28  ;;  %p3487_p9 = scmp.eq.s32.totalorder %s2968_s22, 0 }
  0x18   : > { %3505 = sst [smem:[#allocation22_spill]] %s3504_s29  ;;  %p2996_p10 = pnand %p2206_p7, %p392_p8 }
  0x19   : > { %s2844_s16 = smov [#allocation5]   ;;  %s2845_s25 = smov [#allocation2]  }
  0x1a   : > { %s3506_s30 = scalar_select %p2996_p10, 1, 0 }
  0x1b   : > { %s424_s17 = sshll.u32 %s2844_s16, 4  ;;  %p2516_p11 = pneg %p2996_p10  ;;  %s3002_s17 = int_to_ptr.vmem [resolvable:$true] %s424_s17 }
  0x1c   : > { %s414_s26 = sshll.u32 %s2845_s25, 4  ;;  %s2846_s27 = smov [#allocation7]   ;;  %s3010_s26 = int_to_ptr.vmem [resolvable:$true] %s414_s26 }
  0x1d   : > { %p3006_p12 = pnand %p3487_p9, %p2516_p11  ;;  %s3012_s20 = sshll.u32 %s2846_s27, 4  ;;  %s438_s20 = int_to_ptr.vmem [resolvable:$true] %s3012_s20 }
  0x1e   : > { %s2656_s16 = scalar_lea.hbm %s3471_s7, 256 }
  0x1f   : > { %p2657_p13 = scmp.ne.s32.totalorder %s3471_s7, %s2656_s16  ;;  %p3022_p0 = pneg %p3006_p12 }
  0x20   : > { %p2663_p3 = scmp.lt.u32.totalorder %s2656_s16, %s3471_s7 }
  0x21   : > { %p2659_p1 = pnand %p3022_p0, %p2657_p13 }
  0x23   : > { %p2660_p2 = pneg %p2659_p1 }
  0x25   : > { %p2665_p4 = pnand %p2663_p3, %p2660_p2 }
  0x27   : > { %2668 = shalt.err (!%p2665_p4)
}
  0x28   : > { %s2669_s18 = scalar_lea.vmem %s3002_s17, 256  ;;  %p2677_p9 = scmp.lt.s32.totalorder %s3002_s17, %s3002_s17 }
  0x29   : > { %p2670_p7 = scmp.ne.s32.totalorder %s3002_s17, %s2669_s18  ;;  %p2678_p6 = scmp.lt.s32.totalorder %s2669_s18, %s2669_s18 }
  0x2b   : > { %p2672_p8 = pnand %p2670_p7, %p3022_p0  ;;  %p2679_p13 = por %p2678_p6, %p2677_p9 }
  0x2d   : > { %p2673_p11 = pneg %p2672_p8 }
  0x2f   : > { %p2680_p1 = pnand %p2679_p13, %p2673_p11 }
  0x31   : > { %2683 = shalt.err (!%p2680_p1)
}
  0x32   : > { %s2847_s21 = smov 64   ;;  %s2848_s24 = smov 4  }
  0x33   : > { %2522 = dma.hbm_to_vmem [thread:$0]  (!%p3006_p12), %s3471_s7, 256, %s3002_s17, [#allocation6], %s2847_s21, %s2847_s21, %s2848_s24  }
  0x34   : > { %s2684_s18 = scalar_lea.hbm %s3470_s6, 32 }
  0x35   : > { %p2685_p6 = scmp.ne.s32.totalorder %s3470_s6, %s2684_s18  ;;  %p2691_p3 = scmp.lt.u32.totalorder %s2684_s18, %s3470_s6 }
  0x37   : > { %p2687_p9 = pnand %p2685_p6, %p3022_p0 }
  0x39   : > { %p2688_p2 = pneg %p2687_p9 }
  0x3b   : > { %p2693_p4 = pnand %p2691_p3, %p2688_p2 }
  0x3d   : > { %2696 = shalt.err (!%p2693_p4)
}
  0x3e   : > { %s2697_s17 = scalar_lea.vmem %s3010_s26, 32  ;;  %p2705_p13 = scmp.lt.s32.totalorder %s3010_s26, %s3010_s26 }
  0x3f   : > { %p2698_p7 = scmp.ne.s32.totalorder %s3010_s26, %s2697_s17  ;;  %p2706_p1 = scmp.lt.s32.totalorder %s2697_s17, %s2697_s17 }
  0x41   : > { %p2700_p8 = pnand %p2698_p7, %p3022_p0  ;;  %p2707_p6 = por %p2706_p1, %p2705_p13 }
  0x43   : > { %p2701_p11 = pneg %p2700_p8 }
  0x45   : > { %p2708_p9 = pnand %p2707_p6, %p2701_p11 }
  0x47   : > { %2711 = shalt.err (!%p2708_p9)
}
  0x48   : > { %2519 = dma.hbm_to_vmem [thread:$0]  (!%p3006_p12), %s3470_s6, 32, %s3010_s26, [#allocation3]  }
  0x49   : > { %s2712_s29 = scalar_lea.hbm %s3472_s8, 256 }
  0x4a   : > { %p2713_p2 = scmp.ne.s32.totalorder %s3472_s8, %s2712_s29  ;;  %p2719_p7 = scmp.lt.u32.totalorder %s2712_s29, %s3472_s8 }
  0x4c   : > { %p2715_p3 = pnand %p2713_p2, %p3022_p0 }
  0x4e   : > { %p2716_p4 = pneg %p2715_p3 }
  0x50   : > { %p2721_p8 = pnand %p2719_p7, %p2716_p4 }
  0x52   : > { %2724 = shalt.err (!%p2721_p8)
}
  0x53   : > { %s2725_s17 = scalar_lea.vmem %s438_s20, 256  ;;  %p2733_p6 = scmp.lt.s32.totalorder %s438_s20, %s438_s20 }
  0x54   : > { %p2726_p11 = scmp.ne.s32.totalorder %s438_s20, %s2725_s17  ;;  %p2734_p9 = scmp.lt.s32.totalorder %s2725_s17, %s2725_s17 }
  0x56   : > { %p2728_p13 = pnand %p2726_p11, %p3022_p0  ;;  %p2735_p5 = por %p2734_p9, %p2733_p6 }
  0x58   : > { %p2729_p1 = pneg %p2728_p13 }
  0x5a   : > { %p2736_p10 = pnand %p2735_p5, %p2729_p1 }
  0x5c   : > { %2739 = shalt.err (!%p2736_p10)
}
  0x5d   : > { %2525 = dma.hbm_to_vmem [thread:$0]  (!%p3006_p12), %s3472_s8, 256, %s438_s20, [#allocation6], %s2847_s21, %s2847_s21, %s2848_s24  }
  0x5e   : > { %s2849_s14 = smov [#allocation8]   ;;  %s2740_s16 = scalar_lea.hbm %s3475_s11, 256 }
  0x5f   : > { %s456_s19 = sshll.u32 %s2849_s14, 4  ;;  %p2741_p5 = scmp.ne.s32.totalorder %s3475_s11, %s2740_s16  ;;  %s457_s19 = int_to_ptr.vmem [resolvable:$true] %s456_s19 }
  0x60   : > { %p2747_p3 = scmp.lt.u32.totalorder %s2740_s16, %s3475_s11 }
  0x61   : > { %p2743_p10 = pnand %p2741_p5, %p3022_p0 }
  0x63   : > { %p2744_p2 = pneg %p2743_p10 }
  0x65   : > { %p2749_p4 = pnand %p2747_p3, %p2744_p2 }
  0x67   : > { %2752 = shalt.err (!%p2749_p4)
}
  0x68   : > { %s2753_s20 = scalar_lea.vmem %s457_s19, 256  ;;  %p2761_p13 = scmp.lt.s32.totalorder %s457_s19, %s457_s19 }
  0x69   : > { %p2754_p7 = scmp.ne.s32.totalorder %s457_s19, %s2753_s20  ;;  %p2762_p1 = scmp.lt.s32.totalorder %s2753_s20, %s2753_s20 }
  0x6b   : > { %p2756_p8 = pnand %p2754_p7, %p3022_p0  ;;  %p2763_p6 = por %p2762_p1, %p2761_p13 }
  0x6d   : > { %p2757_p11 = pneg %p2756_p8 }
  0x6f   : > { %p2764_p9 = pnand %p2763_p6, %p2757_p11 }
  0x71   : > { %2767 = shalt.err (!%p2764_p9)
}
  0x72   : > { %2528 = dma.hbm_to_vmem [thread:$0]  (!%p3006_p12), %s3475_s11, 256, %s457_s19, [#allocation9], %s2847_s21, %s2847_s21, %s2848_s24  }
  0x73   : > { %p3509_p5 = scmp.ne.s32.totalorder %s3506_s30, 0 }
  0x74   : > { %p3510_p0 = scmp.eq.s32.totalorder (!%p3509_p5), %s2968_s22, 0 }
  0x75   : > { %502 = sbr.rel (%p3509_p5) target bundleno = 4976 (0x1370), region = 80 }
  0x7c   : > { %2813 = dma.done.wait (%p3510_p0), [#allocation3], 32   ;;  %p3511_p10 = pmov %p3510_p0 }
  0x7d   : > { %p3512_p2 = pmov %p3510_p0 }
  0x7e   : > { %2815 = vsyncadd (%p3511_p10), [#allocation3], 4294967264 }
  0x7f   : > { %2817 = dma.done.wait (%p3512_p2), [#allocation6], 512   ;;  %p3513_p3 = pmov %p3510_p0 }
  0x80   : > { %p3514_p4 = pmov %p3510_p0 }
  0x81   : > { %2819 = vsyncadd (%p3513_p3), [#allocation6], 4294966784 }
  0x82   : > { %2821 = dma.done.wait (%p3514_p4), [#allocation9], 256   ;;  %p3515_p12 = pmov %p3510_p0 }
  0x83   : > { %p569_p7 = scmp.lt.s32.totalorder %s2968_s22, 1  ;;  %vm587_vm0 = vcmask 261120   ;;  %v2596_v7 = vld [vmem:[%s3468_s4] sm:$0xff]   ;;  %v2850_v8 = vmov 0.0   ;;  %vm2851_vm1 = vmmov 0   ;;  %v2597_v9 = vld [vmem:[%s3468_s4 + $0x8] sm:$0xff]  }
  0x84   : > { %2823 = vsyncadd (%p3515_p12), [#allocation9], 4294967040  ;;  %2334 = vmatprep.subr.bf16.mxu1 %v2850_v8  ;;  %2338 = vmatprep.mubr.msk.bf16.mxu1 %vm2851_vm1, %v2850_v8  ;;  %v2221_v14 = vld [vmem:[%s3467_s3] ss:$0 sm:$0xff]  ;;  %v2222_v16 = vld [vmem:[%s3467_s3 + $0x1] ss:$0 sm:$0xff] }
  0x85   : > { %s570_s15 = scalar_select %p569_p7, %s2968_s22, 1  ;;  %2335 = vmatpush3.bf16.msra.mxu1 %v2596_v7  ;;  %2360 = vmatprep.subr.bf16.mxu0 %v2850_v8  ;;  %vm676_vm2 = vcmask 64512   ;;  %vm740_vm3 = vcmask 1043456   ;;  %vm1127_vm4 = vcmask 130048   ;;  %vm1129_vm5 = vcmask 195584  }
  0x86   : > { %2336 = vmatprep.subr.bf16.mxu1 %v2850_v8  ;;  %2362 = vmatprep.mubr.msk.bf16.mxu0 %vm2851_vm1, %v2850_v8  ;;  %s2852_s17 = smov 64   ;;  %s2853_s20 = smov 96  }
  0x87   : > { %s3128_s30 = sshll.u32 %s570_s15, 3  ;;  %s2854_s23 = smov 80  }
  0x88   : > { %s572_s24 = scalar_lea.vmem %s3464_s0, %s3128_s30  ;;  %s580_s15 = scalar_lea.vmem %s3466_s2, %s3128_s30 }
  0x89   : > { %v3134_v0 = vld [vmem:[%s572_s24] sm:$0xff]  ;;  %2337 = vmatpush3.bf16.msra.mxu1 %v2597_v9  ;;  %s2855_s21 = smov 88   ;;  %s2856_s24 = smov 120  }
  0x8a   : > { %v588_v1 = vsel %vm587_vm0, %v3134_v0, 0.0  ;;  %2342 = vmatprep.subr.bf16.mxu1 %v2850_v8  ;;  %v3180_v29 = vld [vmem:[%s580_s15] sm:$0xff]  ;;  %s2857_s14 = smov 112   ;;  %s2858_s19 = smov 72  }
  0x8b   : > { %589 = vadd.xlane.f32.xlu0 %v588_v1  ;;  %s2859_s28 = smov 104   ;;  %s2860_s29 = smov 48  }
  0x8c   : > { %s2861_s16 = smov 56   ;;  %s2862_s25 = smov 40  }
  0x8d   : > { %s2864_s15 = smov 16   ;;  %s576_s27 = scalar_lea.vmem %s3465_s1, %s3128_s30 }
  0x8e   : > { %s3517_s26 = sld [smem:[#allocation16_spill]]  ;;  %s2272_s30 = sshll.u32 %s2968_s22, 7 }
  0x8f   : > { %s2866_s18 = smov [#allocation10]  }
  0x94   : > { %s566_s12 = sand.u32 1, %s3517_s26  }
  0x95   : > { %s2068_s22 = scalar_lea.sflag [#allocation4], %s566_s12 }
 0x118   : > { %v590_v2 = vpop.xlane.xlu0 %589 }
 0x119   : > { %v592_v3 = vmul.f32 0.03125, %v590_v2 }
 0x11b   : > { %v593_v4 = vsub.f32 %v3134_v0, %v592_v3 }
 0x11d   : > { %v594_v5 = vmul.f32 %v593_v4, %v593_v4 }
 0x11f   : > { %v595_v6 = vsel %vm587_vm0, %v594_v5, 0.0 }
 0x120   : > { %596 = vadd.xlane.f32.xlu0 %v595_v6 }
 0x1ad   : > { %v597_v10 = vpop.xlane.xlu0 %596 }
 0x1ae   : > { %v598_v11 = vmul.f32 0.03125, %v597_v10 }
 0x1b0   : > { %v599_v12 = vadd.f32 1e-05, %v598_v11 }
 0x1b2   : > { %2616 = vrsqrt.f32 %v599_v12 }
 0x1bc   : > { %v2617_v13 = vpop.eup %2616 }
 0x1bd   : > { %v601_v15 = vmul.f32 %v2617_v13, %v593_v4 }
 0x1bf   : > { %v606_v17 = vmul.f32 %v2221_v14, %v601_v15 }
 0x1c1   : > { %v611_v18 = vadd.f32 %v2222_v16, %v606_v17 }
 0x1c3   : > { %v612_v19 = vpack.c.bf16 %v611_v18, %v611_v18 }
 0x1c5   : > { %2339 = vmatmul.mubr.msk.bf16.vlgmr.msra.gmra.mrb[0].mxu1 %vm587_vm0, %v612_v19 }
 0x1c6   : > { %2344 = vmatprep.mubr.msk.bf16.mxu1 %vm2851_vm1, %v2850_v8 }
 0x298   : > { %v666_v20 = vpop.f32.mrb[0].mxu1 }
 0x299   : > { %v3163_v21 = vpack.c.bf16 %v666_v20, %v666_v20  ;;  %v2340_v22 = vpop.f32.mrb[1].mxu1 }
 0x29a   : > { %v669_v23 = vpop.f32.mrb[2].mxu1 }
 0x29b   : > { %735 = vrot.lane.b32.xlu0 %v3163_v21, %s2852_s17  ;;  %674 = vrot.lane.b32.xlu1 %v3163_v21, %s2853_s20  ;;  %v2341_v24 = vpop.f32.mrb[3].mxu1  ;;  %s2863_s17 = smov 8  }
 0x30d   : > { %v675_v25 = vpop.permute.xlu1 %674  ;;  %v736_v27 = vpop.permute.xlu0 %735 }
 0x30e   : > { %v681_v26 = vsel %vm676_vm2, %v675_v25, 0  ;;  %v742_v28 = vsel %vm740_vm3, %v736_v27, 0 }
 0x30f   : > { %2343 = vmatpush3.bf16.xpose.msra.mxu1 %v681_v26 }
 0x310   : > { %2348 = vmatprep.subr.bf16.mxu1 %v2850_v8 }
 0x316   : > { %2345 = vmatmul.mubr.msk.bf16.vlgmr.msra.gmra.mrb[4].mxu1 %vm676_vm2, %v3163_v21 }
 0x317   : > { %2349 = vmatpush3.bf16.msra.mxu1 %v742_v28  ;;  %2350 = vmatprep.mubr.msk.bf16.mxu1 %vm2851_vm1, %v2850_v8 }
 0x318   : > { %2354 = vmatprep.subr.bf16.mxu1 %v2850_v8 }
 0x3e9   : > { %v717_v30 = vpop.f32.mrb[4].mxu1 }
 0x3ea   : > { %v718_v31 = vadd.f32 %v717_v30, %v3180_v29  ;;  %v2346_v32 = vpop.f32.mrb[5].mxu1 }
 0x3eb   : > { %v720_v33 = vpop.f32.mrb[6].mxu1 }
 0x3ec   : > { %v2347_v34 = vpop.f32.mrb[7].mxu1  ;;  %v723_v35 = vsel %vm676_vm2, %v718_v31, -inf }
 0x3ed   : > { %724 = vmax.xlane.f32.xlu1 %v723_v35 }
 0x3fe   : > { %896 = vrot.lane.b32.xlu1 %v3163_v21, %s2854_s23 }
 0x47a   : > { %v725_v36 = vpop.xlane.xlu1 %724 }
 0x47b   : > { %v726_v37 = vsub.f32 %v718_v31, %v725_v36 }
 0x47d   : > { %v727_v38 = vmul.f32 1.442695, %v726_v37 }
 0x47e   : > { %v897_v48 = vpop.permute.xlu1 %896 }
 0x47f   : > { %2618 = vpow2.f32 %v727_v38  ;;  %v902_v50 = vsel %vm676_vm2, %v897_v48, 0 }
 0x489   : > { %v2619_v39 = vpop.eup %2618 }
 0x48a   : > { %v729_v40 = vsel %vm676_vm2, %v2619_v39, 0.0 }
 0x48b   : > { %730 = vadd.xlane.f32.xlu0 %v729_v40 }
 0x4a1   : > { %786 = vrot.lane.b32.xlu0 %v3163_v21, %s2855_s21 }
 0x4a5   : > { %784 = vrot.lane.b32.xlu0 %v3163_v21, %s2856_s24 }
 0x4a9   : > { %894 = vrot.lane.b32.xlu0 %v3163_v21, %s2857_s14 }
 0x4ad   : > { %1006 = vrot.lane.b32.xlu0 %v3163_v21, %s2858_s19 }
 0x4b1   : > { %1004 = vrot.lane.b32.xlu0 %v3163_v21, %s2859_s28 }
 0x518   : > { %v731_v41 = vpop.xlane.xlu0 %730 }
 0x519   : > { %2620 = vrcp.f32 %v731_v41 }
 0x51c   : > { %v787_v43 = vpop.permute.xlu0 %786 }
 0x51d   : > { %v792_v46 = vsel %vm676_vm2, %v787_v43, 0 }
 0x520   : > { %v785_v47 = vpop.permute.xlu0 %784 }
 0x523   : > { %v2621_v42 = vpop.eup %2620 }
 0x524   : > { %v733_v44 = vmul.f32 %v2621_v42, %v2619_v39  ;;  %v895_v49 = vpop.permute.xlu0 %894 }
 0x526   : > { %v734_v45 = vpack.c.bf16 %v733_v44, %v733_v44 }
 0x528   : > { %2351 = vmatmul.mubr.msk.bf16.vlgmr.msra.gmra.mrb[8].mxu1 %vm676_vm2, %v734_v45  ;;  %v1007_v51 = vpop.permute.xlu0 %1006 }
 0x529   : > { %2355 = vmatpush3.bf16.xpose.msra.mxu1 %v792_v46  ;;  %2356 = vmatprep.mubr.msk.bf16.mxu1 %vm2851_vm1, %v2850_v8  ;;  %v1012_v52 = vsel %vm676_vm2, %v1007_v51, 0 }
 0x52a   : > { %2366 = vmatprep.subr.bf16.mxu1 %v2850_v8 }
 0x52c   : > { %v1005_v53 = vpop.permute.xlu0 %1004 }
 0x530   : > { %2357 = vmatmul.mubr.msk.bf16.vlgmr.msra.gmra.mrb[12].mxu1 %vm676_vm2, %v785_v47  ;;  %v2598_v47 = vld [vmem:[%s3469_s5] sm:$0xff]  }
 0x531   : > { %2367 = vmatpush3.bf16.xpose.msra.mxu1 %v902_v50  ;;  %2368 = vmatprep.mubr.msk.bf16.mxu1 %vm2851_vm1, %v2850_v8 }
 0x532   : > { %2378 = vmatprep.subr.bf16.mxu1 %v2850_v8 }
 0x538   : > { %2369 = vmatmul.mubr.msk.bf16.vlgmr.msra.gmra.mrb[16].mxu1 %vm676_vm2, %v895_v49 }
 0x539   : > { %2379 = vmatpush3.bf16.xpose.msra.mxu1 %v1012_v52  ;;  %2380 = vmatprep.mubr.msk.bf16.mxu1 %vm2851_vm1, %v2850_v8  ;;  %v2599_v52 = vld [vmem:[%s3469_s5 + $0x8] sm:$0xff]  }
 0x53a   : > { %2390 = vmatprep.subr.bf16.mxu1 %v2850_v8 }
 0x540   : > { %2381 = vmatmul.mubr.msk.bf16.vlgmr.msra.gmra.mrb[20].mxu1 %vm676_vm2, %v1005_v53 }
 0x541   : > { %2394 = vmatprep.mubr.msk.bf16.mxu1 %vm2851_vm1, %v2850_v8  ;;  %2391 = vmatpush3.bf16.msra.mxu1 %v2598_v47 }
 0x542   : > { %2392 = vmatprep.subr.bf16.mxu1 %v2850_v8 }
 0x545   : > { %2393 = vmatpush3.bf16.msra.mxu1 %v2599_v52 }
 0x546   : > { %2406 = vmatprep.subr.bf16.mxu1 %v2850_v8 }
 0x5fb   : > { %v3215_v54 = vpop.f32.mrb[8].mxu1 }
 0x5fc   : > { %v2352_v55 = vpop.f32.mrb[9].mxu1 }
 0x5fd   : > { %v781_v56 = vpop.f32.mrb[10].mxu1 }
 0x5fe   : > { %v2353_v57 = vpop.f32.mrb[11].mxu1 }
 0x603   : > { %v828_v58 = vpop.f32.mrb[12].mxu1 }
 0x604   : > { %v829_v59 = vadd.f32 %v828_v58, %v3180_v29  ;;  %v2358_v60 = vpop.f32.mrb[13].mxu1 }
 0x605   : > { %v831_v61 = vpop.f32.mrb[14].mxu1 }
 0x606   : > { %v2359_v62 = vpop.f32.mrb[15].mxu1  ;;  %v834_v63 = vsel %vm676_vm2, %v829_v59, -inf }
 0x607   : > { %835 = vmax.xlane.f32.xlu0 %v834_v63 }
 0x60b   : > { %v938_v1 = vpop.f32.mrb[16].mxu1 }
 0x60c   : > { %v939_v2 = vadd.f32 %v938_v1, %v3180_v29  ;;  %v2370_v3 = vpop.f32.mrb[17].mxu1 }
 0x60d   : > { %v941_v4 = vpop.f32.mrb[18].mxu1 }
 0x60e   : > { %v2371_v5 = vpop.f32.mrb[19].mxu1  ;;  %v944_v6 = vsel %vm676_vm2, %v939_v2, -inf }
 0x60f   : > { %945 = vmax.xlane.f32.xlu1 %v944_v6 }
 0x613   : > { %v1048_v7 = vpop.f32.mrb[20].mxu1 }
 0x614   : > { %v1049_v9 = vadd.f32 %v1048_v7, %v3180_v29  ;;  %v2382_v10 = vpop.f32.mrb[21].mxu1 }
 0x615   : > { %v1051_v11 = vpop.f32.mrb[22].mxu1 }
 0x616   : > { %v2383_v12 = vpop.f32.mrb[23].mxu1  ;;  %v1054_v13 = vsel %vm676_vm2, %v1049_v9, -inf }
 0x617   : > { %1055 = vmax.xlane.f32.xlu0 %v1054_v13 }
 0x620   : > { %956 = vrot.lane.b32.xlu1 %v3163_v21, %s2860_s29  ;;  %s2865_s29 = smov 24  }
 0x694   : > { %v836_v14 = vpop.xlane.xlu0 %835 }
 0x695   : > { %v837_v15 = vsub.f32 %v829_v59, %v836_v14 }
 0x697   : > { %v838_v16 = vmul.f32 1.442695, %v837_v15 }
 0x699   : > { %2622 = vpow2.f32 %v838_v16 }
 0x69c   : > { %v946_v17 = vpop.xlane.xlu1 %945 }
 0x69d   : > { %v947_v18 = vsub.f32 %v939_v2, %v946_v17  ;;  %v583_v17 = vld [vmem:[%s576_s27] sm:$0xff]  ;;  %s3519_s27 = sld [smem:[#allocation21_spill]] }
 0x69f   : > { %v948_v19 = vmul.f32 1.442695, %v947_v18  ;;  %v2601_v18 = vld [vmem:[#allocation7 + $0x8] sm:$0xff]  }
 0x6a0   : > { %v957_v33 = vpop.permute.xlu1 %956 }
 0x6a1   : > { %2624 = vpow2.f32 %v948_v19  ;;  %v962_v39 = vsel %vm740_vm3, %v957_v33, 0  ;;  %v1277_v19 = vpack.c.bf16 %v583_v17, %v583_v17 }
 0x6a3   : > { %v2623_v20 = vpop.eup %2622  ;;  %p3521_p11 = scmp.ne.s32.totalorder %s3519_s27, 0 }
 0x6a4   : > { %v1056_v22 = vpop.xlane.xlu0 %1055  ;;  %v840_v23 = vsel %vm676_vm2, %v2623_v20, 0.0 }
 0x6a5   : > { %v1057_v24 = vsub.f32 %v1049_v9, %v1056_v22  ;;  %841 = vadd.xlane.f32.xlu0 %v840_v23  ;;  %v2603_v22 = vld [vmem:[#allocation5 + $0x8] sm:$0xff]  }
 0x6a7   : > { %v1058_v25 = vmul.f32 1.442695, %v1057_v24 }
 0x6a9   : > { %2626 = vpow2.f32 %v1058_v25 }
 0x6ab   : > { %v2625_v26 = vpop.eup %2624 }
 0x6ac   : > { %v950_v27 = vsel %vm676_vm2, %v2625_v26, 0.0 }
 0x6ad   : > { %951 = vadd.xlane.f32.xlu0 %v950_v27  ;;  %v2237_v27 = vld [vmem:[#allocation2] ss:$0 sm:$0xff] }
 0x6b3   : > { %v2627_v28 = vpop.eup %2626 }
 0x6b4   : > { %v1060_v29 = vsel %vm676_vm2, %v2627_v28, 0.0 }
 0x6b5   : > { %1061 = vadd.xlane.f32.xlu1 %v1060_v29  ;;  %v2238_v29 = vld [vmem:[#allocation2 + $0x1] ss:$0 sm:$0xff] }
 0x6c3   : > { %846 = vrot.lane.b32.xlu0 %v3163_v21, %s2861_s16 }
 0x6c6   : > { %1066 = vrot.lane.b32.xlu1 %v3163_v21, %s2862_s25  ;;  %s3518_s25 = sld [smem:[#allocation24_spill]] }
 0x732   : > { %v842_v30 = vpop.xlane.xlu0 %841 }
 0x733   : > { %2628 = vrcp.f32 %v842_v30 }
 0x73a   : > { %v952_v31 = vpop.xlane.xlu0 %951 }
 0x73b   : > { %2630 = vrcp.f32 %v952_v31 }
 0x73d   : > { %v2629_v32 = vpop.eup %2628 }
 0x73e   : > { %v847_v34 = vpop.permute.xlu0 %846  ;;  %v844_v35 = vmul.f32 %v2629_v32, %v2623_v20  ;;  %v2602_v20 = vld [vmem:[#allocation5] sm:$0xff]  }
 0x73f   : > { %v852_v36 = vsel %vm740_vm3, %v847_v34, 0 }
 0x740   : > { %2361 = vmatpush3.bf16.msra.mxu0 %v852_v36  ;;  %v845_v37 = vpack.c.bf16 %v844_v35, %v844_v35 }
 0x741   : > { %2372 = vmatprep.subr.bf16.mxu0 %v2850_v8 }
 0x742   : > { %v1062_v38 = vpop.xlane.xlu1 %1061 }
 0x743   : > { %2632 = vrcp.f32 %v1062_v38  ;;  %2363 = vmatmul.mubr.msk.bf16.vlgmr.msra.gmra.mrb[0].mxu0 %vm676_vm2, %v845_v37 }
 0x744   : > { %2373 = vmatpush3.bf16.msra.mxu0 %v962_v39  ;;  %2374 = vmatprep.mubr.msk.bf16.mxu0 %vm2851_vm1, %v2850_v8 }
 0x745   : > { %v2631_v21 = vpop.eup %2630  ;;  %2384 = vmatprep.subr.bf16.mxu0 %v2850_v8 }
 0x746   : > { %v954_v40 = vmul.f32 %v2631_v21, %v2625_v26  ;;  %v1067_v41 = vpop.permute.xlu1 %1066 }
 0x747   : > { %v1072_v43 = vsel %vm740_vm3, %v1067_v41, 0 }
 0x748   : > { %v955_v42 = vpack.c.bf16 %v954_v40, %v954_v40 }
 0x74b   : > { %2375 = vmatmul.mubr.msk.bf16.vlgmr.msra.gmra.mrb[4].mxu0 %vm676_vm2, %v955_v42 }
 0x74c   : > { %2385 = vmatpush3.bf16.msra.mxu0 %v1072_v43  ;;  %2386 = vmatprep.mubr.msk.bf16.mxu0 %vm2851_vm1, %v2850_v8 }
 0x74d   : > { %v2633_v44 = vpop.eup %2632  ;;  %2398 = vmatprep.subr.bf16.mxu0 %v2850_v8 }
 0x74e   : > { %v1064_v45 = vmul.f32 %v2633_v44, %v2627_v28 }
 0x750   : > { %v1065_v46 = vpack.c.bf16 %v1064_v45, %v1064_v45 }
 0x753   : > { %2387 = vmatmul.mubr.msk.bf16.vlgmr.msra.gmra.mrb[8].mxu0 %vm676_vm2, %v1065_v46 }
 0x754   : > { %2402 = vmatprep.mubr.msk.bf16.mxu0 %vm2851_vm1, %v2850_v8  ;;  %2399 = vmatpush3.bf16.msra.mxu0 %v2602_v20 }
 0x755   : > { %2400 = vmatprep.subr.bf16.mxu0 %v2850_v8 }
 0x758   : > { %2401 = vmatpush3.bf16.msra.mxu0 %v2603_v22 }
 0x759   : > { %2414 = vmatprep.subr.bf16.mxu0 %v2850_v8 }
 0x816   : > { %v888_v48 = vpop.f32.mrb[0].mxu0 }
 0x817   : > { %1115 = vrot.lane.b32.xlu1 %v888_v48, %s2863_s17  ;;  %v2364_v49 = vpop.f32.mrb[1].mxu0 }
 0x818   : > { %v891_v50 = vpop.f32.mrb[2].mxu0 }
 0x819   : > { %v2365_v51 = vpop.f32.mrb[3].mxu0 }
 0x81e   : > { %v998_v53 = vpop.f32.mrb[4].mxu0 }
 0x81f   : > { %1119 = vrot.lane.b32.xlu0 %v998_v53, %s2864_s15  ;;  %v2376_v55 = vpop.f32.mrb[5].mxu0 }
 0x820   : > { %v1001_v56 = vpop.f32.mrb[6].mxu0 }
 0x821   : > { %v2377_v57 = vpop.f32.mrb[7].mxu0 }
 0x826   : > { %v1108_v58 = vpop.f32.mrb[8].mxu0 }
 0x827   : > { %1123 = vrot.lane.b32.xlu1 %v1108_v58, %s2865_s29  ;;  %v2388_v59 = vpop.f32.mrb[9].mxu0 }
 0x828   : > { %v1111_v60 = vpop.f32.mrb[10].mxu0 }
 0x829   : > { %v2389_v61 = vpop.f32.mrb[11].mxu0 }
 0x889   : > { %v1116_v62 = vpop.permute.xlu1 %1115 }
 0x88a   : > { %v1126_v1 = vsel %vm676_vm2, %v3215_v54, %v1116_v62 }
 0x891   : > { %v1120_v63 = vpop.permute.xlu0 %1119 }
 0x892   : > { %v1128_v2 = vsel %vm1127_vm4, %v1126_v1, %v1120_v63 }
 0x899   : > { %v1124_v3 = vpop.permute.xlu1 %1123 }
 0x89a   : > { %v1130_v4 = vsel %vm1129_vm5, %v1128_v2, %v1124_v3 }
 0x89b   : > { %v1131_v5 = vpack.c.bf16 %v1130_v4, %v1130_v4 }
 0x89d   : > { %2395 = vmatmul.mubr.msk.bf16.vlgmr.msra.gmra.mrb[24].mxu1 %vm587_vm0, %v1131_v5 }
 0x89e   : > { %2410 = vmatprep.mubr.msk.bf16.mxu1 %vm2851_vm1, %v2850_v8 }
 0x970   : > { %v1185_v6 = vpop.f32.mrb[24].mxu1 }
 0x971   : > { %v3263_v7 = vadd.f32 %v1185_v6, %v3134_v0  ;;  %v2396_v9 = vpop.f32.mrb[25].mxu1  ;;  %v2600_v0 = vld [vmem:[#allocation7] sm:$0xff]  }
 0x972   : > { %v1188_v10 = vpop.f32.mrb[26].mxu1  ;;  %2407 = vmatpush3.bf16.msra.mxu1 %v2600_v0 }
 0x973   : > { %v2397_v11 = vpop.f32.mrb[27].mxu1  ;;  %v1194_v54 = vsel %vm587_vm0, %v3263_v7, 0.0  ;;  %2408 = vmatprep.subr.bf16.mxu1 %v2850_v8 }
 0x974   : > { %1195 = vadd.xlane.f32.xlu0 %v1194_v54 }
 0x976   : > { %2409 = vmatpush3.bf16.msra.mxu1 %v2601_v18 }
 0x977   : > { %2420 = vmatprep.subr.bf16.mxu1 %v2850_v8 }
 0x979   : > { %2411 = vmatmul.mubr.msk.bf16.vlgmr.msra.gmra.mrb[28].mxu1 %vm587_vm0, %v1277_v19 }
 0x97a   : > { %2422 = vmatprep.mubr.msk.bf16.mxu1 %vm2851_vm1, %v2850_v8 }
 0xa01   : > { %v1196_v12 = vpop.xlane.xlu0 %1195 }
 0xa02   : > { %v1197_v13 = vmul.f32 0.03125, %v1196_v12 }
 0xa04   : > { %v1198_v14 = vsub.f32 %v3263_v7, %v1197_v13 }
 0xa06   : > { %v1199_v15 = vmul.f32 %v1198_v14, %v1198_v14 }
 0xa08   : > { %v1200_v16 = vsel %vm587_vm0, %v1199_v15, 0.0 }
 0xa09   : > { %1201 = vadd.xlane.f32.xlu1 %v1200_v16 }
 0xa4c   : > { %v1331_v33 = vpop.f32.mrb[28].mxu1 }
 0xa4d   : > { %v3283_v34 = vpack.c.bf16 %v1331_v33, %v1331_v33  ;;  %v2412_v35 = vpop.f32.mrb[29].mxu1 }
 0xa4e   : > { %v1334_v36 = vpop.f32.mrb[30].mxu1 }
 0xa4f   : > { %1449 = vrot.lane.b32.xlu0 %v3283_v34, %s2856_s24  ;;  %v2413_v37 = vpop.f32.mrb[31].mxu1  ;;  %v1343_v38 = vsel %vm676_vm2, %v3283_v34, 0 }
 0xa53   : > { %1559 = vrot.lane.b32.xlu0 %v3283_v34, %s2857_s14 }
 0xa57   : > { %1669 = vrot.lane.b32.xlu0 %v3283_v34, %s2859_s28 }
 0xa96   : > { %v1202_v23 = vpop.xlane.xlu1 %1201 }
 0xa97   : > { %v1203_v24 = vmul.f32 0.03125, %v1202_v23 }
 0xa99   : > { %v1204_v25 = vadd.f32 1e-05, %v1203_v24 }
 0xa9b   : > { %2634 = vrsqrt.f32 %v1204_v25 }
 0xaa5   : > { %v2635_v26 = vpop.eup %2634 }
 0xaa6   : > { %v1206_v28 = vmul.f32 %v2635_v26, %v1198_v14 }
 0xaa8   : > { %v1211_v30 = vmul.f32 %v2237_v27, %v1206_v28 }
 0xaaa   : > { %v1216_v31 = vadd.f32 %v2238_v29, %v1211_v30 }
 0xaac   : > { %v1217_v32 = vpack.c.bf16 %v1216_v31, %v1216_v31 }
 0xaae   : > { %2403 = vmatmul.mubr.msk.bf16.vlgmr.msra.gmra.mrb[12].mxu0 %vm587_vm0, %v1217_v32 }
 0xaaf   : > { %2416 = vmatprep.mubr.msk.bf16.mxu0 %vm2851_vm1, %v2850_v8  ;;  %2415 = vmatpush3.bf16.xpose.msra.mxu0 %v1343_v38 }
 0xab0   : > { %2426 = vmatprep.subr.bf16.mxu0 %v2850_v8 }
 0xac1   : > { %v1450_v21 = vpop.permute.xlu0 %1449 }
 0xac2   : > { %v1455_v42 = vsel %vm676_vm2, %v1450_v21, 0 }
 0xac5   : > { %v1560_v45 = vpop.permute.xlu0 %1559 }
 0xac6   : > { %v1565_v47 = vsel %vm676_vm2, %v1560_v45, 0 }
 0xac9   : > { %v1670_v48 = vpop.permute.xlu0 %1669 }
 0xaca   : > { %v1675_v50 = vsel %vm676_vm2, %v1670_v48, 0 }
 0xb81   : > { %v1271_v39 = vpop.f32.mrb[12].mxu0 }
 0xb82   : > { %v1337_v40 = vpack.c.bf16 %v1271_v39, %v1271_v39  ;;  %v2404_v41 = vpop.f32.mrb[13].mxu0 }
 0xb83   : > { %v1274_v43 = vpop.f32.mrb[14].mxu0 }
 0xb84   : > { %1447 = vrot.lane.b32.xlu1 %v1337_v40, %s2856_s24  ;;  %v2405_v44 = vpop.f32.mrb[15].mxu0  ;;  %2417 = vmatmul.mubr.msk.bf16.vlgmr.msra.gmra.mrb[16].mxu0 %vm676_vm2, %v1337_v40 }
 0xb85   : > { %2427 = vmatpush3.bf16.xpose.msra.mxu0 %v1455_v42  ;;  %2428 = vmatprep.mubr.msk.bf16.mxu0 %vm2851_vm1, %v2850_v8 }
 0xb86   : > { %2438 = vmatprep.subr.bf16.mxu0 %v2850_v8 }
 0xb88   : > { %1557 = vrot.lane.b32.xlu1 %v1337_v40, %s2857_s14  ;;  %s3520_s14 = sld [smem:[#allocation25_spill]] }
 0xb8c   : > { %1667 = vrot.lane.b32.xlu1 %v1337_v40, %s2859_s28 }
 0xbf6   : > { %v1448_v46 = vpop.permute.xlu1 %1447 }
 0xbf7   : > { %2429 = vmatmul.mubr.msk.bf16.vlgmr.msra.gmra.mrb[20].mxu0 %vm676_vm2, %v1448_v46 }
 0xbf8   : > { %2439 = vmatpush3.bf16.xpose.msra.mxu0 %v1565_v47  ;;  %2440 = vmatprep.mubr.msk.bf16.mxu0 %vm2851_vm1, %v2850_v8 }
 0xbf9   : > { %2450 = vmatprep.subr.bf16.mxu0 %v2850_v8 }
 0xbfa   : > { %v1558_v49 = vpop.permute.xlu1 %1557 }
 0xbfe   : > { %v1668_v51 = vpop.permute.xlu1 %1667 }
 0xbff   : > { %2441 = vmatmul.mubr.msk.bf16.vlgmr.msra.gmra.mrb[24].mxu0 %vm676_vm2, %v1558_v49 }
 0xc00   : > { %2451 = vmatpush3.bf16.xpose.msra.mxu0 %v1675_v50  ;;  %2452 = vmatprep.mubr.msk.bf16.mxu0 %vm2851_vm1, %v2850_v8 }
 0xc01   : > { %2462 = vmatprep.subr.bf16.mxu0 %v2850_v8 }
 0xc07   : > { %2453 = vmatmul.mubr.msk.bf16.vlgmr.msra.gmra.mrb[28].mxu0 %vm676_vm2, %v1668_v51 }
 0xc08   : > { %2466 = vmatprep.mubr.msk.bf16.mxu0 %vm2851_vm1, %v2850_v8 }
 0xc57   : > { %v1379_v52 = vpop.f32.mrb[16].mxu0 }
 0xc58   : > { %v2418_v53 = vpop.f32.mrb[17].mxu0  ;;  %v1385_v55 = vsel %vm676_vm2, %v1379_v52, -inf }
 0xc59   : > { %1386 = vmax.xlane.f32.xlu0 %v1385_v55  ;;  %v1382_v56 = vpop.f32.mrb[18].mxu0 }
 0xc5a   : > { %v2419_v57 = vpop.f32.mrb[19].mxu0 }
 0xcca   : > { %v1491_v58 = vpop.f32.mrb[20].mxu0 }
 0xccb   : > { %v2430_v59 = vpop.f32.mrb[21].mxu0  ;;  %v1497_v60 = vsel %vm676_vm2, %v1491_v58, -inf }
 0xccc   : > { %1498 = vmax.xlane.f32.xlu1 %v1497_v60  ;;  %v1494_v61 = vpop.f32.mrb[22].mxu0  ;;  %v2604_v59 = vld [vmem:[%s3473_s9] sm:$0xff]  }
 0xccd   : > { %v2431_v62 = vpop.f32.mrb[23].mxu0  ;;  %2463 = vmatpush3.bf16.msra.mxu0 %v2604_v59 }
 0xcce   : > { %2464 = vmatprep.subr.bf16.mxu0 %v2850_v8 }
 0xcd2   : > { %v1601_v63 = vpop.f32.mrb[24].mxu0 }
 0xcd3   : > { %v2442_v1 = vpop.f32.mrb[25].mxu0  ;;  %v1607_v2 = vsel %vm676_vm2, %v1601_v63, -inf }
 0xcd4   : > { %1608 = vmax.xlane.f32.xlu0 %v1607_v2  ;;  %v1604_v3 = vpop.f32.mrb[26].mxu0 }
 0xcd5   : > { %v2443_v4 = vpop.f32.mrb[27].mxu0 }
 0xcda   : > { %v1711_v5 = vpop.f32.mrb[28].mxu0 }
 0xcdb   : > { %v2454_v6 = vpop.f32.mrb[29].mxu0  ;;  %v1717_v9 = vsel %vm676_vm2, %v1711_v5, -inf }
 0xcdc   : > { %1718 = vmax.xlane.f32.xlu0 %v1717_v9  ;;  %v1714_v10 = vpop.f32.mrb[30].mxu0 }
 0xcdd   : > { %v2455_v11 = vpop.f32.mrb[31].mxu0 }
 0xce6   : > { %v1387_v54 = vpop.xlane.xlu0 %1386 }
 0xce7   : > { %v1388_v12 = vsub.f32 %v1379_v52, %v1387_v54 }
 0xce9   : > { %v1389_v13 = vmul.f32 1.442695, %v1388_v12 }
 0xceb   : > { %2636 = vpow2.f32 %v1389_v13 }
 0xcf5   : > { %v2637_v14 = vpop.eup %2636 }
 0xcf6   : > { %v1391_v15 = vsel %vm676_vm2, %v2637_v14, 0.0 }
 0xcf7   : > { %1392 = vadd.xlane.f32.xlu0 %v1391_v15 }
 0xd59   : > { %v1499_v16 = vpop.xlane.xlu1 %1498 }
 0xd5a   : > { %v1500_v0 = vsub.f32 %v1491_v58, %v1499_v16 }
 0xd5c   : > { %v1501_v17 = vmul.f32 1.442695, %v1500_v0 }
 0xd5e   : > { %2638 = vpow2.f32 %v1501_v17 }
 0xd61   : > { %v1609_v18 = vpop.xlane.xlu0 %1608 }
 0xd62   : > { %v1610_v19 = vsub.f32 %v1601_v63, %v1609_v18 }
 0xd64   : > { %v1611_v20 = vmul.f32 1.442695, %v1610_v19 }
 0xd66   : > { %2640 = vpow2.f32 %v1611_v20 }
 0xd68   : > { %v2639_v22 = vpop.eup %2638 }
 0xd69   : > { %v1503_v23 = vsel %vm676_vm2, %v2639_v22, 0.0  ;;  %v1719_v26 = vpop.xlane.xlu0 %1718 }
 0xd6a   : > { %1504 = vadd.xlane.f32.xlu1 %v1503_v23  ;;  %v1720_v27 = vsub.f32 %v1711_v5, %v1719_v26  ;;  %v2605_v5 = vld [vmem:[%s3473_s9 + $0x8] sm:$0xff]  }
 0xd6b   : > { %2465 = vmatpush3.bf16.msra.mxu0 %v2605_v5 }
 0xd6c   : > { %v1721_v28 = vmul.f32 1.442695, %v1720_v27  ;;  %2478 = vmatprep.subr.bf16.mxu0 %v2850_v8 }
 0xd6e   : > { %2642 = vpow2.f32 %v1721_v28 }
 0xd70   : > { %v2641_v24 = vpop.eup %2640 }
 0xd71   : > { %v1613_v25 = vsel %vm676_vm2, %v2641_v24, 0.0 }
 0xd72   : > { %1614 = vadd.xlane.f32.xlu0 %v1613_v25 }
 0xd78   : > { %v2643_v29 = vpop.eup %2642 }
 0xd79   : > { %v1723_v30 = vsel %vm676_vm2, %v2643_v29, 0.0 }
 0xd7b   : > { %1509 = vrot.lane.b32.xlu1 %v3283_v34, %s2855_s21 }
 0xd7f   : > { %1619 = vrot.lane.b32.xlu1 %v3283_v34, %s2854_s23 }
 0xd84   : > { %v1393_v31 = vpop.xlane.xlu0 %1392 }
 0xd85   : > { %2644 = vrcp.f32 %v1393_v31 }
 0xd88   : > { %1398 = vrot.lane.b32.xlu0 %v3283_v34, %s2853_s20 }
 0xd8f   : > { %v2645_v33 = vpop.eup %2644 }
 0xd90   : > { %v1395_v36 = vmul.f32 %v2645_v33, %v2637_v14 }
 0xd92   : > { %v1396_v21 = vpack.c.bf16 %v1395_v36, %v1395_v36  ;;  %v2256_v36 = vld [vmem:[%s3474_s10] ss:$0 sm:$0xff] }
 0xda3   : > { %1724 = vadd.xlane.f32.xlu1 %v1723_v30  ;;  %v2607_v30 = vld [vmem:[#allocation8 + $0x8] sm:$0xff]  }
 0xdb4   : > { %1729 = vrot.lane.b32.xlu1 %v3283_v34, %s2858_s19  ;;  %s3421_s19 = scalar_lea.hbm %s3520_s14, %s2272_s30 }
 0xdf7   : > { %v1505_v32 = vpop.xlane.xlu1 %1504 }
 0xdf8   : > { %2646 = vrcp.f32 %v1505_v32 }
 0xdfb   : > { %v1510_v39 = vpop.permute.xlu1 %1509 }
 0xdfc   : > { %v1515_v41 = vsel %vm740_vm3, %v1510_v39, 0 }
 0xdff   : > { %v1615_v35 = vpop.xlane.xlu0 %1614  ;;  %v1620_v42 = vpop.permute.xlu1 %1619 }
 0xe00   : > { %2648 = vrcp.f32 %v1615_v35  ;;  %v1625_v45 = vsel %vm740_vm3, %v1620_v42, 0  ;;  %v2611_v42 = vld [vmem:[%s3477_s13 + $0x18] sm:$0xff]  }
 0xe02   : > { %v2647_v40 = vpop.eup %2646 }
 0xe03   : > { %v1399_v37 = vpop.permute.xlu0 %1398  ;;  %v1507_v34 = vmul.f32 %v2647_v40, %v2639_v22 }
 0xe04   : > { %v1404_v38 = vsel %vm740_vm3, %v1399_v37, 0 }
 0xe05   : > { %2421 = vmatpush3.bf16.msra.mxu1 %v1404_v38  ;;  %v1508_v43 = vpack.c.bf16 %v1507_v34, %v1507_v34  ;;  %v2257_v38 = vld [vmem:[%s3474_s10 + $0x1] ss:$0 sm:$0xff]  ;;  %v2610_v34 = vld [vmem:[%s3477_s13 + $0x10] sm:$0xff]  }
 0xe06   : > { %2432 = vmatprep.subr.bf16.mxu1 %v2850_v8 }
 0xe08   : > { %2423 = vmatmul.mubr.msk.bf16.vlgmr.msra.gmra.mrb[32].mxu1 %vm676_vm2, %v1396_v21 }
 0xe09   : > { %2433 = vmatpush3.bf16.msra.mxu1 %v1515_v41  ;;  %2434 = vmatprep.mubr.msk.bf16.mxu1 %vm2851_vm1, %v2850_v8  ;;  %v2609_v41 = vld [vmem:[%s3477_s13 + $0x8] sm:$0xff]  }
 0xe0a   : > { %2444 = vmatprep.subr.bf16.mxu1 %v2850_v8  ;;  %v2649_v44 = vpop.eup %2648 }
 0xe0b   : > { %v1617_v46 = vmul.f32 %v2649_v44, %v2641_v24  ;;  %v2613_v44 = vld [vmem:[%s3477_s13 + $0x28] sm:$0xff]  }
 0xe0d   : > { %v1618_v47 = vpack.c.bf16 %v1617_v46, %v1617_v46  ;;  %v2615_v46 = vld [vmem:[%s3477_s13 + $0x38] sm:$0xff]  }
 0xe10   : > { %2435 = vmatmul.mubr.msk.bf16.vlgmr.msra.gmra.mrb[36].mxu1 %vm676_vm2, %v1508_v43  ;;  %v2612_v43 = vld [vmem:[%s3477_s13 + $0x20] sm:$0xff]  }
 0xe11   : > { %2445 = vmatpush3.bf16.msra.mxu1 %v1625_v45  ;;  %2446 = vmatprep.mubr.msk.bf16.mxu1 %vm2851_vm1, %v2850_v8  ;;  %v2614_v45 = vld [vmem:[%s3477_s13 + $0x30] sm:$0xff]  }
 0xe12   : > { %2456 = vmatprep.subr.bf16.mxu1 %v2850_v8 }
 0xe18   : > { %2447 = vmatmul.mubr.msk.bf16.vlgmr.msra.gmra.mrb[40].mxu1 %vm676_vm2, %v1618_v47 }
 0xe19   : > { %2458 = vmatprep.mubr.msk.bf16.mxu1 %vm2851_vm1, %v2850_v8 }
 0xe30   : > { %v1725_v48 = vpop.xlane.xlu1 %1724 }
 0xe31   : > { %2650 = vrcp.f32 %v1725_v48 }
 0xe34   : > { %v1730_v49 = vpop.permute.xlu1 %1729 }
 0xe35   : > { %v1735_v50 = vsel %vm740_vm3, %v1730_v49, 0 }
 0xe36   : > { %2457 = vmatpush3.bf16.msra.mxu1 %v1735_v50 }
 0xe37   : > { %2470 = vmatprep.subr.bf16.mxu1 %v2850_v8 }
 0xe3b   : > { %v2651_v51 = vpop.eup %2650 }
 0xe3c   : > { %v1727_v52 = vmul.f32 %v2651_v51, %v2643_v29  ;;  %v2606_v29 = vld [vmem:[#allocation8] sm:$0xff]  }
 0xe3e   : > { %v1728_v53 = vpack.c.bf16 %v1727_v52, %v1727_v52 }
 0xe40   : > { %2459 = vmatmul.mubr.msk.bf16.vlgmr.msra.gmra.mrb[44].mxu1 %vm676_vm2, %v1728_v53 }
 0xe41   : > { %2474 = vmatprep.mubr.msk.bf16.mxu1 %vm2851_vm1, %v2850_v8  ;;  %2471 = vmatpush3.bf16.msra.mxu1 %v2606_v29 }
 0xe42   : > { %2472 = vmatprep.subr.bf16.mxu1 %v2850_v8 }
 0xe45   : > { %2473 = vmatpush3.bf16.msra.mxu1 %v2607_v30 }
 0xedb   : > { %v1440_v55 = vpop.f32.mrb[32].mxu1 }
 0xedc   : > { %v2424_v56 = vpop.f32.mrb[33].mxu1 }
 0xedd   : > { %v1443_v57 = vpop.f32.mrb[34].mxu1 }
 0xede   : > { %v2425_v58 = vpop.f32.mrb[35].mxu1 }
 0xee3   : > { %v1551_v60 = vpop.f32.mrb[36].mxu1 }
 0xee4   : > { %1778 = vrot.lane.b32.xlu0 %v1551_v60, %s2863_s17  ;;  %v2436_v61 = vpop.f32.mrb[37].mxu1  ;;  %s3516_s17 = sld [smem:[#allocation23_spill]] }
 0xee5   : > { %v1554_v62 = vpop.f32.mrb[38].mxu1 }
 0xee6   : > { %v2437_v63 = vpop.f32.mrb[39].mxu1 }
 0xee7   : > { %v2262_v63 = vld [vmem:[%s3518_s25] ss:$0 sm:$0xff] }
 0xeea   : > { %v2258_v47 = vld [vmem:[%s3516_s17] ss:$0 sm:$0xff]  ;;  %s2772_s17 = sshll.u32 %s2866_s18, 4  ;;  %s2773_s17 = int_to_ptr.vmem [resolvable:$false] %s2772_s17 }
 0xeeb   : > { %v1661_v1 = vpop.f32.mrb[40].mxu1  ;;  %s2774_s26 = scalar_lea.vmem %s2773_s17, 256 }
 0xeec   : > { %1782 = vrot.lane.b32.xlu1 %v1661_v1, %s2864_s15  ;;  %v2448_v2 = vpop.f32.mrb[41].mxu1  ;;  %s2217_s15 = sshll.u32 %s566_s12, 3 }
 0xeed   : > { %v1664_v3 = vpop.f32.mrb[42].mxu1  ;;  %s568_s20 = scalar_lea.vmem [#allocation10], %s2217_s15 }
 0xeee   : > { %v2449_v4 = vpop.f32.mrb[43].mxu1  ;;  %s2081_s23 = sshll.u32 %s568_s20, 4  ;;  %s3423_s23 = int_to_ptr.vmem [resolvable:$true] %s2081_s23 }
 0xeef   : > { %s2768_s28 = scalar_lea.vmem %s3423_s23, 128  ;;  %p2775_p6 = scmp.lt.s32.totalorder %s3423_s23, %s2773_s17 }
 0xef0   : > { %p2769_p8 = scmp.ne.s32.totalorder %s3423_s23, %s2768_s28  ;;  %p2776_p9 = scmp.lt.s32.totalorder %s2774_s26, %s2768_s28 }
 0xef2   : > { %p2770_p13 = pnand %p2769_p8, %p3521_p11  ;;  %p2777_p5 = por %p2776_p9, %p2775_p6 }
 0xef4   : > { %p2771_p1 = pneg %p2770_p13 }
 0xef6   : > { %p2778_p0 = pnand %p2777_p5, %p2771_p1 }
 0xf13   : > { %v1771_v6 = vpop.f32.mrb[44].mxu1 }
 0xf14   : > { %1786 = vrot.lane.b32.xlu0 %v1771_v6, %s2865_s29  ;;  %v2460_v9 = vpop.f32.mrb[45].mxu1 }
 0xf15   : > { %v1774_v10 = vpop.f32.mrb[46].mxu1 }
 0xf16   : > { %v2461_v11 = vpop.f32.mrb[47].mxu1 }
 0xf56   : > { %v1779_v54 = vpop.permute.xlu0 %1778 }
 0xf57   : > { %v1789_v13 = vsel %vm676_vm2, %v1440_v55, %v1779_v54 }
 0xf5e   : > { %v1783_v12 = vpop.permute.xlu1 %1782 }
 0xf5f   : > { %v1790_v14 = vsel %vm1127_vm4, %v1789_v13, %v1783_v12 }
 0xf86   : > { %v1787_v15 = vpop.permute.xlu0 %1786 }
 0xf87   : > { %v1791_v16 = vsel %vm1129_vm5, %v1790_v14, %v1787_v15 }
 0xf88   : > { %v1792_v0 = vpack.c.bf16 %v1791_v16, %v1791_v16 }
 0xf8a   : > { %2467 = vmatmul.mubr.msk.bf16.vlgmr.msra.gmra.mrb[32].mxu0 %vm587_vm0, %v1792_v0 }
 0xf8b   : > { %2494 = vmatprep.mubr.msk.bf16.mxu0 %vm2851_vm1, %v2850_v8 }
0x105d   : > { %v1846_v17 = vpop.f32.mrb[32].mxu0 }
0x105e   : > { %v1852_v18 = vadd.f32 %v1846_v17, %v3263_v7  ;;  %v2468_v19 = vpop.f32.mrb[33].mxu0  ;;  %v2608_v7 = vld [vmem:[%s3477_s13] sm:$0xff]  }
0x105f   : > { %v1849_v20 = vpop.f32.mrb[34].mxu0  ;;  %2479 = vmatpush3.bf16.msra.mxu0 %v2608_v7 }
0x1060   : > { %v2469_v22 = vpop.f32.mrb[35].mxu0  ;;  %v1855_v23 = vsel %vm587_vm0, %v1852_v18, 0.0  ;;  %2480 = vmatprep.subr.bf16.mxu0 %v2850_v8 }
0x1061   : > { %1856 = vadd.xlane.f32.xlu1 %v1855_v23 }
0x1063   : > { %2481 = vmatpush3.bf16.msra.mxu0 %v2609_v41 }
0x1064   : > { %2482 = vmatprep.subr.bf16.mxu0 %v2850_v8 }
0x1067   : > { %2483 = vmatpush3.bf16.msra.mxu0 %v2610_v34 }
0x1068   : > { %2484 = vmatprep.subr.bf16.mxu0 %v2850_v8 }
0x106b   : > { %2485 = vmatpush3.bf16.msra.mxu0 %v2611_v42 }
0x106c   : > { %2486 = vmatprep.subr.bf16.mxu0 %v2850_v8 }
0x106f   : > { %2487 = vmatpush3.bf16.msra.mxu0 %v2612_v43 }
0x1070   : > { %2488 = vmatprep.subr.bf16.mxu0 %v2850_v8 }
0x1073   : > { %2489 = vmatpush3.bf16.msra.mxu0 %v2613_v44 }
0x1074   : > { %2490 = vmatprep.subr.bf16.mxu0 %v2850_v8 }
0x1077   : > { %2491 = vmatpush3.bf16.msra.mxu0 %v2614_v45 }
0x1078   : > { %2492 = vmatprep.subr.bf16.mxu0 %v2850_v8 }
0x107b   : > { %2493 = vmatpush3.bf16.msra.mxu0 %v2615_v46 }
0x10ee   : > { %v1857_v24 = vpop.xlane.xlu1 %1856 }
0x10ef   : > { %v1858_v25 = vmul.f32 0.03125, %v1857_v24 }
0x10f1   : > { %v1859_v26 = vsub.f32 %v1852_v18, %v1858_v25 }
0x10f3   : > { %v1860_v27 = vmul.f32 %v1859_v26, %v1859_v26 }
0x10f5   : > { %v1861_v28 = vsel %vm587_vm0, %v1860_v27, 0.0 }
0x10f6   : > { %1862 = vadd.xlane.f32.xlu0 %v1861_v28 }
0x1183   : > { %v1863_v31 = vpop.xlane.xlu0 %1862 }
0x1184   : > { %v1864_v32 = vmul.f32 0.03125, %v1863_v31 }
0x1186   : > { %v1865_v33 = vadd.f32 1e-05, %v1864_v32 }
0x1188   : > { %2652 = vrsqrt.f32 %v1865_v33 }
0x1192   : > { %v2653_v35 = vpop.eup %2652 }
0x1193   : > { %v1867_v37 = vmul.f32 %v2653_v35, %v1859_v26 }
0x1195   : > { %v1872_v39 = vmul.f32 %v2256_v36, %v1867_v37 }
0x1197   : > { %v1877_v21 = vadd.f32 %v2257_v38, %v1872_v39 }
0x1199   : > { %v1878_v40 = vpack.c.bf16 %v1877_v21, %v1877_v21 }
0x119b   : > { %2475 = vmatmul.mubr.msk.bf16.vlgmr.msra.gmra.mrb[48].mxu1 %vm587_vm0, %v1878_v40 }
0x126e   : > { %v1939_v48 = vpop.f32.mrb[48].mxu1 }
0x126f   : > { %v1940_v49 = vadd.f32 %v2258_v47, %v1939_v48  ;;  %v2476_v50 = vpop.f32.mrb[49].mxu1 }
0x1270   : > { %v1942_v51 = vpop.f32.mrb[50].mxu1 }
0x1271   : > { %v1946_v52 = vmul.f32 0.044715, %v1940_v49  ;;  %v2477_v53 = vpop.f32.mrb[51].mxu1  ;;  %v1945_v8 = vmul.f32 0.5, %v1940_v49 }
0x1273   : > { %v1947_v55 = vmul.f32 %v1946_v52, %v1940_v49 }
0x1275   : > { %v1948_v56 = vmul.f32 %v1947_v55, %v1940_v49 }
0x1277   : > { %v1949_v57 = vadd.f32 %v1948_v56, %v1940_v49 }
0x1279   : > { %v1950_v58 = vmul.f32 0.7978846, %v1949_v57 }
0x127b   : > { %2654 = vtanh.f32 %v1950_v58 }
0x1285   : > { %v2655_v59 = vpop.eup %2654 }
0x1286   : > { %v1952_v60 = vadd.f32 1.0, %v2655_v59 }
0x1288   : > { %v1953_v61 = vmul.f32 %v1952_v60, %v1945_v8 }
0x128a   : > { %v1954_v62 = vpack.c.bf16 %v1953_v61, %v1953_v61 }
0x128c   : > { %2495 = vmatmul.mubr.bf16.vlgmr.msra.gmra.mrb[36].mxu0 %v1954_v62 }
0x135f   : > { %v2060_v1 = vpop.f32.mrb[36].mxu0 }
0x1360   : > { %v2061_v2 = vadd.f32 %v2262_v63, %v2060_v1  ;;  %v2496_v3 = vpop.f32.mrb[37].mxu0 }
0x1361   : > { %v2063_v4 = vpop.f32.mrb[38].mxu0 }
0x1362   : > { %v2497_v5 = vpop.f32.mrb[39].mxu0  ;;  %2066 = vst.msk [vmem:[%s568_s20] sm:$0xff] %vm587_vm0, %v2061_v2 }
0x1363   : > { %2781 = shalt.err (!%p2778_p0)
}
0x1364   : > { %s2782_s12 = scalar_lea.hbm %s3421_s19, 128  ;;  %s2786_s16 = scalar_lea.hbm %s3520_s14, 256 }
0x1365   : > { %p2783_p10 = scmp.ne.s32.totalorder %s3421_s19, %s2782_s12  ;;  %p2787_p4 = scmp.lt.u32.totalorder %s3421_s19, %s3520_s14 }
0x1366   : > { %p2788_p12 = scmp.lt.u32.totalorder %s2786_s16, %s2782_s12  ;;  %p2790_p8 = scmp.lt.u32.totalorder %s2782_s12, %s3421_s19 }
0x1367   : > { %p2784_p2 = pnand %p2783_p10, %p3521_p11 }
0x1368   : > { %p2789_p7 = por %p2788_p12, %p2787_p4 }
0x1369   : > { %p2785_p3 = pneg %p2784_p2 }
0x136a   : > { %p2791_p13 = por %p2790_p8, %p2789_p7 }
0x136c   : > { %p2792_p1 = pnand %p2791_p13, %p2785_p3 }
0x136e   : > { %2795 = shalt.err (!%p2792_p1)
}
0x136f   : > { %2514 = dma.vmem_to_hbm [thread:$0]  (%p3521_p11), %s3423_s23, 128, %s3421_s19, %s2068_s22  }
0x1370 PF: > { %s3522_s20 = sld [smem:[#allocation18_spill]]  ;;  %s3523_s21 = sld [smem:[#allocation15_spill]] }
0x1371   : > { %s3524_s24 = sld [smem:[#allocation22_spill]] }
0x1376   : > { %p2541_p6 = scmp.ge.s32.totalorder %s3522_s20, 2  ;;  %s2093_s28 = sand.u32 1, %s3523_s21  }
0x1377   : > { %p3525_p9 = scmp.ne.s32.totalorder %s3524_s24, 0  ;;  %s2094_s18 = scalar_lea.sflag [#allocation4], %s2093_s28 }
0x1379   : > { %p2530_p5 = pnand %p2541_p6, %p3525_p9 }
0x137b   : > { %2825 = dma.done.wait (!%p2530_p5), %s2094_s18, 128  }
0x137c   : > { %2827 = vsyncadd (!%p2530_p5), %s2094_s18, 4294967168  ;;  %s3526_s21 = sld [smem:[#allocation19_spill]]  ;;  %s3527_s18 = sld [smem:[#allocation16_spill]] }
0x137d   : > { %s3528_s19 = sld [smem:[#allocation17_spill]]  ;;  %s3529_s20 = sld [smem:[#allocation20_spill]] }
0x1382   : > { %p28_p0 = scmp.ge.s32.totalorder %s3526_s21, 4  }
0x1384   :  { %30 = sbr.rel (!%p28_p0) target bundleno = 10 (0xa), region = 138 }
0x138b   :  { %2099 = vsyncpa [#allocation3], 1 }
0x138c   :  { %2101 = vsyncpa [#allocation3 + $0x1], 1 }
0x138d   :  { %2102 = vsyncpa [#allocation6], 1 }
0x138e   :  { %2103 = vsyncpa [#allocation9], 1 }
0x138f   :  { %2104 = vsyncpa [#allocation4], 1 }
0x1390   :  { %2106 = vsyncpa [#allocation4 + $0x1], 1 }

</bundles_post_ra>
